<compile_context>
chip_gen: v7x
topology: tpu7x:2x2x1
jax: 0.10.0
libtpu: 0.0.40
codegen_flags: <defaults>
</compile_context>

<pallas_src>
import functools

import jax
import jax.numpy as jnp
from jax.experimental import pallas as pl
from jax.experimental.pallas import tpu as pltpu

# ----------------------------- small HuBERT config --------------------------
CONV_LAYERS = [(16, 4, 2), (16, 2, 2)]   # (out_dim, kernel, stride); in_dim of layer0 = 1
CONV_DIM_LAST = CONV_LAYERS[-1][0]
HIDDEN = 32
NUM_HEADS = 4
HEAD_DIM = HIDDEN // NUM_HEADS
FFN = 64
NUM_ENC_LAYERS = 2
POS_K = 4            # positional conv kernel (even -> one trailing frame removed, SamePad)
POS_GROUPS = 2
POS_CG = HIDDEN // POS_GROUPS
DOWNSAMPLE = 2       # cfg.downsample_factor
NUM_LABELS = 10      # cfg.label_target_size  -> output dim = 11
FINAL_N_PAD = 128    # pad final-linear N to a full lane width (lane-dense stores)
EPS = 1e-5
NEG_BIG = -1e9


# ------------------------------- helpers -------------------------------------
def _layernorm(x, g, b, eps):
    mean = jnp.mean(x, axis=-1, keepdims=True)
    var = jnp.mean(jnp.square(x - mean), axis=-1, keepdims=True)
    return (x - mean) * jax.lax.rsqrt(var + eps) * g + b


def _const_spec(arr):
    zeros = (0,) * arr.ndim
    return pl.BlockSpec(arr.shape, lambda i, _z=zeros: _z)


# ------------------------------- Pallas kernels ------------------------------
def _conv0_gn_gelu_kernel(p_ref, w_ref, g_ref, b_ref, o_ref, *, eps):
    # conv0-as-matmul + GroupNorm(num_groups=C) over time + GELU
    # block: patches bf16 [1, T0, k0], w bf16 [k0, C0], g/b f32 [1, C0] -> o bf16 [1, T0, C0]
    y = jnp.dot(p_ref[0], w_ref[...], preferred_element_type=jnp.float32)   # [T0, C0]
    mean = jnp.mean(y, axis=0, keepdims=True)                 # per-channel stats over time
    var = jnp.mean(jnp.square(y - mean), axis=0, keepdims=True)
    y = (y - mean) * jax.lax.rsqrt(var + eps) * g_ref[...] + b_ref[...]
    o_ref[0] = jax.nn.gelu(y, approximate=True).astype(o_ref.dtype)


def _conv1_fp_kernel(p_ref, w_ref, lg_ref, lb_ref, fw_ref, fb_ref, o_ref, *, eps):
    # conv1-as-matmul + GELU + feature-projection LayerNorm + Linear, fused
    # block: patches bf16 [1, T1, k1*C0] -> o bf16 [1, T1, HIDDEN]
    y = jnp.dot(p_ref[0], w_ref[...], preferred_element_type=jnp.float32)   # [T1, C1]
    y = jax.nn.gelu(y, approximate=True)
    yn = _layernorm(y, lg_ref[...], lb_ref[...], eps)
    out = jnp.dot(yn.astype(jnp.bfloat16), fw_ref[...],
                  preferred_element_type=jnp.float32) + fb_ref[...]
    o_ref[0] = out.astype(o_ref.dtype)


def _posconv_add_ln_kernel(hp_ref, w_ref, b_ref, g_ref, bb_ref, o_ref, *,
                           eps, t_out, pad, groups, cg, pos_k):
    # grouped positional conv via shifted pl.ds taps (no im2col) + GELU + residual + encoder LN
    # hp: bf16 [1, T+2*pad, H]  (zero-padded hidden states; residual = hp[pad:pad+T])
    # w : bf16 [G, K, Cg, Cg]   per-group, per-tap matmuls (no block-diagonal MXU waste)
    res = hp_ref[0, pl.ds(pad, t_out), :].astype(jnp.float32)           # [T, H]
    acc = [jnp.zeros((t_out, cg), jnp.float32) for _ in range(groups)]
    for k in range(pos_k):
        hk = hp_ref[0, pl.ds(k, t_out), :]                               # bf16 [T, H]
        for g in range(groups):
            acc[g] = acc[g] + jnp.dot(hk[:, g * cg:(g + 1) * cg], w_ref[g, k],
                                      preferred_element_type=jnp.float32)
    pos = jnp.concatenate(acc, axis=-1) + b_ref[...]
    pos = jax.nn.gelu(pos, approximate=True)
    o_ref[0] = _layernorm(res + pos, g_ref[...], bb_ref[...], eps).astype(o_ref.dtype)


def _encoder_layer_kernel(x_ref, wqkv_ref, bqkv_ref, wo_ref, bo_ref,
                          ln1g_ref, ln1b_ref, ff1w_ref, ff1b_ref,
                          ff2w_ref, ff2b_ref, ln2g_ref, ln2b_ref, o_ref, *,
                          num_heads, head_dim, scale, eps):
    # One fused post-LN transformer layer per batch element.
    # x: bf16 [1, T, H]; wqkv: bf16 [H, 3H] (Q|K|V, head-major inside each); wo: bf16 [H, H].
    # TODO(synk): production: flash-style online softmax over KV tiles + M-tile grid axis.
    x = x_ref[0]                                              # bf16 [T, H]
    xf = x.astype(jnp.float32)
    H = num_heads * head_dim

    # fused QKV projection: one wide MXU matmul instead of 3*nH narrow ones
    qkv = jnp.dot(x, wqkv_ref[...], preferred_element_type=jnp.float32) + bqkv_ref[...]

    heads = []
    for hd in range(num_heads):                               # static unroll (4 heads)
        lo = hd * head_dim
        qh = (qkv[:, lo:lo + head_dim] * scale).astype(jnp.bfloat16)
        kh = qkv[:, H + lo:H + lo + head_dim].astype(jnp.bfloat16)
        vh = qkv[:, 2 * H + lo:2 * H + lo + head_dim].astype(jnp.bfloat16)
        s = jax.lax.dot_general(qh, kh, (((1,), (1,)), ((), ())),
                                preferred_element_type=jnp.float32)      # [T, T]
        m = jnp.max(s, axis=-1, keepdims=True)
        p = jnp.exp(s - m)
        p = p * pl.reciprocal(jnp.sum(p, axis=-1, keepdims=True), approx=True)
        heads.append(jnp.dot(p.astype(jnp.bfloat16), vh,
                             preferred_element_type=jnp.float32))        # [T, D]

    # single fused output projection over concatenated heads
    attn_cat = jnp.concatenate(heads, axis=-1).astype(jnp.bfloat16)      # [T, H]
    attn = jnp.dot(attn_cat, wo_ref[...],
                   preferred_element_type=jnp.float32) + bo_ref[...]

    # residual + LayerNorm1
    h1 = _layernorm(xf + attn, ln1g_ref[...], ln1b_ref[...], eps)

    # feed-forward
    f = jnp.dot(h1.astype(jnp.bfloat16), ff1w_ref[...],
                preferred_element_type=jnp.float32) + ff1b_ref[...]
    f = jax.nn.gelu(f, approximate=True)
    f = jnp.dot(f.astype(jnp.bfloat16), ff2w_ref[...],
                preferred_element_type=jnp.float32) + ff2b_ref[...]

    # residual + LayerNorm2
    h2 = _layernorm(h1 + f, ln2g_ref[...], ln2b_ref[...], eps)
    o_ref[0] = h2.astype(o_ref.dtype)


def _final_kernel(x_ref, w_ref, b_ref, o_ref, *, df):
    # fused: MaxPool2d((df,1)) over time (elementwise VPU max) + final Linear (N padded
    # to 128 lanes) + log_softmax
    # block: x bf16 [1, T_ds, df, H], w bf16 [H, 128], b f32 [1, 128] -> o f32 [1, T_ds, 128]
    x4 = x_ref[0]                                             # bf16 [T_ds, df, H]
    xm = x4[:, 0, :]
    for d in range(1, df):
        xm = jnp.maximum(xm, x4[:, d, :])                     # elementwise, stays on VPU
    logits = jnp.dot(xm, w_ref[...], preferred_element_type=jnp.float32) + b_ref[...]
    m = jnp.max(logits, axis=-1, keepdims=True)
    lse = jnp.log(jnp.sum(jnp.exp(logits - m), axis=-1, keepdims=True)) + m
    o_ref[0] = (logits - lse).astype(o_ref.dtype)


# ------------------------------ Pallas wrappers -------------------------------
# TODO(synk): for production tiles re-derive vmem_limit per generation (v7x 64 MiB physical)
#             and add a T-tile grid axis so the pipeline has >=4 steps per core.
_CP_PAR = pltpu.CompilerParams(dimension_semantics=("parallel",),
                               vmem_limit_bytes=32 * 1024 * 1024)


def pallas_conv0(patches, w, g, b):
    B, T0, K = patches.shape
    C = w.shape[1]
    return pl.pallas_call(
        functools.partial(_conv0_gn_gelu_kernel, eps=EPS),
        grid=(B,),
        in_specs=[pl.BlockSpec((1, T0, K), lambda i: (i, 0, 0)),
                  _const_spec(w), _const_spec(g), _const_spec(b)],
        out_specs=pl.BlockSpec((1, T0, C), lambda i: (i, 0, 0)),
        out_shape=jax.ShapeDtypeStruct((B, T0, C), jnp.bfloat16),
        compiler_params=_CP_PAR,
    )(patches, w, g, b)


def pallas_conv1_fp(patches, w, lg, lb, fw, fb):
    B, T1, K = patches.shape
    H = fw.shape[1]
    return pl.pallas_call(
        functools.partial(_conv1_fp_kernel, eps=EPS),
        grid=(B,),
        in_specs=[pl.BlockSpec((1, T1, K), lambda i: (i, 0, 0)),
                  _const_spec(w), _const_spec(lg), _const_spec(lb),
                  _const_spec(fw), _const_spec(fb)],
        out_specs=pl.BlockSpec((1, T1, H), lambda i: (i, 0, 0)),
        out_shape=jax.ShapeDtypeStruct((B, T1, H), jnp.bfloat16),
        compiler_params=_CP_PAR,
    )(patches, w, lg, lb, fw, fb)


def pallas_posconv_add_ln(hp, w, b, g, bb, *, t_out, pad):
    B, Tp, H = hp.shape
    kern = functools.partial(_posconv_add_ln_kernel, eps=EPS, t_out=t_out, pad=pad,
                             groups=POS_GROUPS, cg=POS_CG, pos_k=POS_K)
    return pl.pallas_call(
        kern,
        grid=(B,),
        in_specs=[pl.BlockSpec((1, Tp, H), lambda i: (i, 0, 0)),
                  _const_spec(w), _const_spec(b), _const_spec(g), _const_spec(bb)],
        out_specs=pl.BlockSpec((1, t_out, H), lambda i: (i, 0, 0)),
        out_shape=jax.ShapeDtypeStruct((B, t_out, H), jnp.bfloat16),
        compiler_params=_CP_PAR,
    )(hp, w, b, g, bb)


def pallas_encoder_layer(h, lp):
    B, T, H = h.shape
    weights = [lp["wqkv"], lp["bqkv"], lp["wo"], lp["bo"],
               lp["ln1_g"], lp["ln1_b"],
               lp["ff1_w"], lp["ff1_b"], lp["ff2_w"], lp["ff2_b"],
               lp["ln2_g"], lp["ln2_b"]]
    kern = functools.partial(_encoder_layer_kernel, num_heads=NUM_HEADS,
                             head_dim=HEAD_DIM, scale=float(HEAD_DIM) ** -0.5, eps=EPS)
    return pl.pallas_call(
        kern,
        grid=(B,),
        in_specs=[pl.BlockSpec((1, T, H), lambda i: (i, 0, 0))] +
                 [_const_spec(w) for w in weights],
        out_specs=pl.BlockSpec((1, T, H), lambda i: (i, 0, 0)),
        out_shape=jax.ShapeDtypeStruct((B, T, H), jnp.bfloat16),
        compiler_params=_CP_PAR,
    )(h, *weights)


def pallas_final(x4, w, b):
    B, Tds, df, H = x4.shape
    N = w.shape[1]
    return pl.pallas_call(
        functools.partial(_final_kernel, df=df),
        grid=(B,),
        in_specs=[pl.BlockSpec((1, Tds, df, H), lambda i: (i, 0, 0, 0)),
                  _const_spec(w), _const_spec(b)],
        out_specs=pl.BlockSpec((1, Tds, N), lambda i: (i, 0, 0)),
        out_shape=jax.ShapeDtypeStruct((B, Tds, N), jnp.float32),
        compiler_params=_CP_PAR,
    )(x4, w, b)


# --------------------------------- glue --------------------------------------
def im2col_1d(x, kernel, stride):
    # x: [B, T, Cin] -> patches [B, T_out, kernel*Cin] (tap-major, then channel)
    # Only used for conv0 (Cin=1, cheap). conv1 uses a pure reshape (kernel==stride).
    # TODO(synk): production conv0 (kernel=10, stride=5) should use an in-kernel
    #             overlapping-tap formulation instead of a JAX-side im2col.
    B, T, C = x.shape
    T_out = (T - kernel) // stride + 1
    cols = []
    for k in range(kernel):
        end = k + stride * (T_out - 1) + 1
        cols.append(x[:, k:end:stride, :])
    patches = jnp.stack(cols, axis=2)                        # [B, T_out, kernel, Cin]
    return patches.reshape(B, T_out, kernel * C), T_out


def model_forward(params, raw_audio, raw_audio_len):
    B, T, _ = raw_audio.shape
    x = raw_audio.astype(jnp.float32)                        # squeeze(-1) kept as Cin=1

    # ---- HuBERT conv feature extractor ----
    (c0, k0, s0), (c1, k1, s1) = CONV_LAYERS
    p0, T0 = im2col_1d(x, k0, s0)                            # [B, T0, k0]
    h0 = pallas_conv0(p0.astype(jnp.bfloat16),
                      params["conv0_w"], params["gn_g"], params["gn_b"])   # bf16 [B,T0,C0]

    # conv1 has kernel == stride == 2 -> exact im2col is a zero-overlap reshape
    T1 = (T0 - k1) // s1 + 1
    p1 = h0[:, :T1 * s1, :].reshape(B, T1, k1 * c0)          # bf16 [B, T1, k1*C0]
    h = pallas_conv1_fp(p1, params["conv1_w"], params["fp_ln_g"], params["fp_ln_b"],
                        params["fp_w"], params["fp_b"])      # bf16 [B, T1, HIDDEN]

    # ---- positional grouped conv (+SamePad trim) + residual + encoder LayerNorm ----
    pad = POS_K // 2
    hp = jnp.pad(h, ((0, 0), (pad, pad), (0, 0)))            # bf16, only +2*pad frames
    h = pallas_posconv_add_ln(hp, params["pos_w"], params["pos_b"],
                              params["enc_ln_g"], params["enc_ln_b"],
                              t_out=T1, pad=pad)             # bf16 [B, T1, HIDDEN]

    # ---- transformer encoder: one fused kernel per layer ----
    for lp in params["layers"]:
        h = pallas_encoder_layer(h, lp)

    # ---- _get_feat_extract_output_lengths ----
    lens = raw_audio_len
    for (_, kk, ss) in CONV_LAYERS:
        lens = (lens - kk) // ss + 1

    # ---- downsample (MaxPool2d) + final_dropout(id) + final_linear + log_softmax ----
    Tds = T1 // DOWNSAMPLE
    x4 = h[:, :Tds * DOWNSAMPLE, :].reshape(B, Tds, DOWNSAMPLE, HIDDEN)
    log_probs_pad = pallas_final(x4, params["final_w_pad"], params["final_b_pad"])
    log_probs = log_probs_pad[:, :, :NUM_LABELS + 1]         # slice off the lane padding
    lens = lens // DOWNSAMPLE
    return log_probs, lens


# ------------------------------ parameter init --------------------------------
def init_params(key):
    keys = jax.random.split(key, 64)
    kit = iter(list(keys))

    def nrm(shape, scale=0.05):
        # weights stored bf16 (halves HBM<->VMEM traffic and VMEM weight buffers)
        return (scale * jax.random.normal(next(kit), shape, dtype=jnp.float32)
                ).astype(jnp.bfloat16)

    def zeros_f32(shape):
        return jnp.zeros(shape, jnp.float32)

    def ones_f32(shape):
        return jnp.ones(shape, jnp.float32)

    # grouped positional conv weights: per-group per-tap matmuls [G, K, Cg_in, Cg_out]
    # TODO(synk): HF stores grouped-conv weights as [H, Cg, K] (+weight-norm); verify layout
    #             parity if real checkpoints are ever loaded.
    pos_w = nrm((POS_GROUPS, POS_K, POS_CG, POS_CG))

    # final linear, zero-padded to 128 output lanes (bias of padded cols = NEG_BIG so
    # they contribute exp(~-1e9)=0 to the log-softmax and are sliced away afterwards;
    # padded weight columns are exactly zero even in bf16, keeping the invariant)
    final_w = nrm((HIDDEN, NUM_LABELS + 1))
    final_w_pad = jnp.zeros((HIDDEN, FINAL_N_PAD), jnp.bfloat16
                            ).at[:, :NUM_LABELS + 1].set(final_w)
    final_b_pad = jnp.full((1, FINAL_N_PAD), NEG_BIG, jnp.float32
                           ).at[0, :NUM_LABELS + 1].set(0.0)

    p = {
        "conv0_w": nrm((CONV_LAYERS[0][1] * 1, CONV_LAYERS[0][0])),
        "gn_g": ones_f32((1, CONV_LAYERS[0][0])),
        "gn_b": zeros_f32((1, CONV_LAYERS[0][0])),
        "conv1_w": nrm((CONV_LAYERS[1][1] * CONV_LAYERS[0][0], CONV_LAYERS[1][0])),
        "fp_ln_g": ones_f32((1, CONV_DIM_LAST)),
        "fp_ln_b": zeros_f32((1, CONV_DIM_LAST)),
        "fp_w": nrm((CONV_DIM_LAST, HIDDEN)),
        "fp_b": zeros_f32((1, HIDDEN)),
        "pos_w": pos_w,
        "pos_b": zeros_f32((1, HIDDEN)),
        "enc_ln_g": ones_f32((1, HIDDEN)),
        "enc_ln_b": zeros_f32((1, HIDDEN)),
        "final_w_pad": final_w_pad,
        "final_b_pad": final_b_pad,
    }
    layers = []
    for _ in range(NUM_ENC_LAYERS):
        layers.append(dict(
            # fused QKV weight [H, 3H]: columns [0:H]=Q, [H:2H]=K, [2H:3H]=V, head-major
            wqkv=nrm((HIDDEN, 3 * HIDDEN)),
            bqkv=zeros_f32((1, 3 * HIDDEN)),
            wo=nrm((HIDDEN, HIDDEN)),
            bo=zeros_f32((1, HIDDEN)),
            ln1_g=ones_f32((1, HIDDEN)), ln1_b=zeros_f32((1, HIDDEN)),
            ff1_w=nrm((HIDDEN, FFN)), ff1_b=zeros_f32((1, FFN)),
            ff2_w=nrm((FFN, HIDDEN)), ff2_b=zeros_f32((1, HIDDEN)),
            ln2_g=ones_f32((1, HIDDEN)), ln2_b=zeros_f32((1, HIDDEN)),
        ))
    p["layers"] = layers
    return p


# ----------------------------------- main -------------------------------------
if __name__ == "__main__":
    key = jax.random.PRNGKey(0)
    k_param, k_audio = jax.random.split(key)

    B, T_AUDIO = 2, 64
    raw_audio = jax.random.normal(k_audio, (B, T_AUDIO, 1), dtype=jnp.float32)
    raw_audio_len = jnp.array([64, 48], dtype=jnp.int32)

    params = init_params(k_param)

    fwd = jax.jit(model_forward)
    log_probs, lens = fwd(params, raw_audio, raw_audio_len)
    jax.block_until_ready((log_probs, lens))

    # sanity: log_probs [B, T'', labels+1], rows are valid log-softmax, lengths valid
    assert log_probs.shape == (B, 7, NUM_LABELS + 1)
    assert lens.shape == (B,)
    assert bool(jnp.all(jnp.isfinite(log_probs)))

    print("KERNEL_OK")
</pallas_src>

<mosaic_0001>
module attributes {stable_mosaic.version = 11 : i64} {
  func.func @_conv0_gn_gelu_kernel(%arg0: i32, %arg1: memref<1x31x4xbf16, #tpu.memory_space<vmem>>, %arg2: memref<4x16xbf16, #tpu.memory_space<vmem>>, %arg3: memref<1x16xf32, #tpu.memory_space<vmem>>, %arg4: memref<1x16xf32, #tpu.memory_space<vmem>>, %arg5: memref<1x31x16xbf16, #tpu.memory_space<vmem>>) attributes {dimension_semantics = [#tpu.dimension_semantics<parallel>], iteration_bounds = array<i64: 2>, scalar_prefetch = 0 : i64, scratch_operands = 0 : i64, tpu.core_type = #tpu.core_type<tc>, window_params = [{transform_indices = @transform_0, window_bounds = array<i64: 1, 31, 4>}, {pipeline_mode = #tpu.pipeline_mode<synchronous>, transform_indices = @transform_1, window_bounds = array<i64: 4, 16>}, {pipeline_mode = #tpu.pipeline_mode<synchronous>, transform_indices = @transform_2, window_bounds = array<i64: 1, 16>}, {pipeline_mode = #tpu.pipeline_mode<synchronous>, transform_indices = @transform_3, window_bounds = array<i64: 1, 16>}, {transform_indices = @transform_4, window_bounds = array<i64: 1, 31, 16>}]} {
    %c0 = arith.constant 0 : index
    %c0_0 = arith.constant 0 : index
    %c0_1 = arith.constant 0 : index
    %0 = vector.load %arg1[%c0, %c0_0, %c0_1] : memref<1x31x4xbf16, #tpu.memory_space<vmem>>, vector<1x31x4xbf16>
    %1 = vector.shape_cast %0 : vector<1x31x4xbf16> to vector<31x4xbf16>
    %c0_2 = arith.constant 0 : index
    %c0_3 = arith.constant 0 : index
    %2 = vector.load %arg2[%c0_2, %c0_3] : memref<4x16xbf16, #tpu.memory_space<vmem>>, vector<4x16xbf16>
    %cst = arith.constant dense<0.000000e+00> : vector<31x16xf32>
    %3 = tpu.matmul %1, %2, %cst {dimension_numbers = #tpu.dot_dimension_numbers<[1], [0], [0], [1], [0, 0, 1, 1], [], []>} : vector<31x4xbf16>, vector<4x16xbf16>, vector<31x16xf32> -> vector<31x16xf32>
    %cst_4 = arith.constant dense<0.000000e+00> : vector<16xf32>
    %4 = vector.multi_reduction <add>, %3, %cst_4 [0] : vector<31x16xf32> to vector<16xf32>
    %5 = vector.shape_cast %4 : vector<16xf32> to vector<1x16xf32>
    %cst_5 = arith.constant 3.100000e+01 : f32
    %6 = vector.broadcast %cst_5 : f32 to vector<1x16xf32>
    %7 = arith.divf %5, %6 : vector<1x16xf32>
    %8 = vector.broadcast %7 : vector<1x16xf32> to vector<31x16xf32>
    %9 = arith.subf %3, %8 : vector<31x16xf32>
    %10 = arith.mulf %9, %9 : vector<31x16xf32>
    %cst_6 = arith.constant dense<0.000000e+00> : vector<16xf32>
    %11 = vector.multi_reduction <add>, %10, %cst_6 [0] : vector<31x16xf32> to vector<16xf32>
    %12 = vector.shape_cast %11 : vector<16xf32> to vector<1x16xf32>
    %cst_7 = arith.constant 3.100000e+01 : f32
    %13 = vector.broadcast %cst_7 : f32 to vector<1x16xf32>
    %14 = arith.divf %12, %13 : vector<1x16xf32>
    %15 = vector.broadcast %7 : vector<1x16xf32> to vector<31x16xf32>
    %16 = arith.subf %3, %15 : vector<31x16xf32>
    %cst_8 = arith.constant 9.99999974E-6 : f32
    %17 = vector.broadcast %cst_8 : f32 to vector<1x16xf32>
    %18 = arith.addf %14, %17 : vector<1x16xf32>
    %19 = math.rsqrt %18 : vector<1x16xf32>
    %20 = vector.broadcast %19 : vector<1x16xf32> to vector<31x16xf32>
    %21 = arith.mulf %16, %20 : vector<31x16xf32>
    %c0_9 = arith.constant 0 : index
    %c0_10 = arith.constant 0 : index
    %22 = vector.load %arg3[%c0_9, %c0_10] : memref<1x16xf32, #tpu.memory_space<vmem>>, vector<1x16xf32>
    %23 = vector.broadcast %22 : vector<1x16xf32> to vector<31x16xf32>
    %24 = arith.mulf %21, %23 : vector<31x16xf32>
    %c0_11 = arith.constant 0 : index
    %c0_12 = arith.constant 0 : index
    %25 = vector.load %arg4[%c0_11, %c0_12] : memref<1x16xf32, #tpu.memory_space<vmem>>, vector<1x16xf32>
    %26 = vector.broadcast %25 : vector<1x16xf32> to vector<31x16xf32>
    %27 = arith.addf %24, %26 : vector<31x16xf32>
    %28 = arith.mulf %27, %27 : vector<31x16xf32>
    %29 = arith.mulf %27, %28 : vector<31x16xf32>
    %cst_13 = arith.constant 4.471500e-02 : f32
    %30 = vector.broadcast %cst_13 : f32 to vector<31x16xf32>
    %31 = arith.mulf %30, %29 : vector<31x16xf32>
    %32 = arith.addf %27, %31 : vector<31x16xf32>
    %cst_14 = arith.constant 0.797884583 : f32
    %33 = vector.broadcast %cst_14 : f32 to vector<31x16xf32>
    %34 = arith.mulf %33, %32 : vector<31x16xf32>
    %35 = math.tanh %34 : vector<31x16xf32>
    %cst_15 = arith.constant 1.000000e+00 : f32
    %36 = vector.broadcast %cst_15 : f32 to vector<31x16xf32>
    %37 = arith.addf %36, %35 : vector<31x16xf32>
    %cst_16 = arith.constant 5.000000e-01 : f32
    %38 = vector.broadcast %cst_16 : f32 to vector<31x16xf32>
    %39 = arith.mulf %38, %37 : vector<31x16xf32>
    %40 = arith.mulf %27, %39 : vector<31x16xf32>
    %41 = arith.truncf %40 : vector<31x16xf32> to vector<31x16xbf16>
    %c0_17 = arith.constant 0 : index
    %c0_18 = arith.constant 0 : index
    %c0_19 = arith.constant 0 : index
    %42 = vector.load %arg5[%c0_17, %c0_18, %c0_19] : memref<1x31x16xbf16, #tpu.memory_space<vmem>>, vector<1x31x16xbf16>
    %43 = vector.shape_cast %42 : vector<1x31x16xbf16> to vector<31x16xbf16>
    %44 = vector.shape_cast %41 : vector<31x16xbf16> to vector<1x31x16xbf16>
    tpu.vector_store %arg5[%c0_17, %c0_18, %c0_19], %44 {strides = array<i32>} : memref<1x31x16xbf16, #tpu.memory_space<vmem>>, vector<1x31x16xbf16>,
    return
  }
  func.func @transform_0(%arg0: i32) -> (i32, i32, i32) {
    %c0_i32 = arith.constant 0 : i32
    %c0_i32_0 = arith.constant 0 : i32
    %c0_i32_1 = arith.constant 0 : i32
    return %arg0, %c0_i32, %c0_i32_0 : i32, i32, i32
  }
  func.func @transform_1(%arg0: i32) -> (i32, i32) {
    %c0_i32 = arith.constant 0 : i32
    %c0_i32_0 = arith.constant 0 : i32
    %c0_i32_1 = arith.constant 0 : i32
    return %c0_i32, %c0_i32_0 : i32, i32
  }
  func.func @transform_2(%arg0: i32) -> (i32, i32) {
    %c0_i32 = arith.constant 0 : i32
    %c0_i32_0 = arith.constant 0 : i32
    %c0_i32_1 = arith.constant 0 : i32
    return %c0_i32, %c0_i32_0 : i32, i32
  }
  func.func @transform_3(%arg0: i32) -> (i32, i32) {
    %c0_i32 = arith.constant 0 : i32
    %c0_i32_0 = arith.constant 0 : i32
    %c0_i32_1 = arith.constant 0 : i32
    return %c0_i32, %c0_i32_0 : i32, i32
  }
  func.func @transform_4(%arg0: i32) -> (i32, i32, i32) {
    %c0_i32 = arith.constant 0 : i32
    %c0_i32_0 = arith.constant 0 : i32
    %c0_i32_1 = arith.constant 0 : i32
    return %arg0, %c0_i32, %c0_i32_0 : i32, i32, i32
  }
}

module attributes {stable_mosaic.version = 11 : i64} {
  func.func @_conv1_fp_kernel(%arg0: i32, %arg1: memref<1x15x32xbf16, #tpu.memory_space<vmem>>, %arg2: memref<32x16xbf16, #tpu.memory_space<vmem>>, %arg3: memref<1x16xf32, #tpu.memory_space<vmem>>, %arg4: memref<1x16xf32, #tpu.memory_space<vmem>>, %arg5: memref<16x32xbf16, #tpu.memory_space<vmem>>, %arg6: memref<1x32xf32, #tpu.memory_space<vmem>>, %arg7: memref<1x15x32xbf16, #tpu.memory_space<vmem>>) attributes {dimension_semantics = [#tpu.dimension_semantics<parallel>], iteration_bounds = array<i64: 2>, scalar_prefetch = 0 : i64, scratch_operands = 0 : i64, tpu.core_type = #tpu.core_type<tc>, window_params = [{transform_indices = @transform_0, window_bounds = array<i64: 1, 15, 32>}, {pipeline_mode = #tpu.pipeline_mode<synchronous>, transform_indices = @transform_1, window_bounds = array<i64: 32, 16>}, {pipeline_mode = #tpu.pipeline_mode<synchronous>, transform_indices = @transform_2, window_bounds = array<i64: 1, 16>}, {pipeline_mode = #tpu.pipeline_mode<synchronous>, transform_indices = @transform_3, window_bounds = array<i64: 1, 16>}, {pipeline_mode = #tpu.pipeline_mode<synchronous>, transform_indices = @transform_4, window_bounds = array<i64: 16, 32>}, {pipeline_mode = #tpu.pipeline_mode<synchronous>, transform_indices = @transform_5, window_bounds = array<i64: 1, 32>}, {transform_indices = @transform_6, window_bounds = array<i64: 1, 15, 32>}]} {
    %c0 = arith.constant 0 : index
    %c0_0 = arith.constant 0 : index
    %c0_1 = arith.constant 0 : index
    %0 = vector.load %arg1[%c0, %c0_0, %c0_1] : memref<1x15x32xbf16, #tpu.memory_space<vmem>>, vector<1x15x32xbf16>
    %1 = vector.shape_cast %0 : vector<1x15x32xbf16> to vector<15x32xbf16>
    %c0_2 = arith.constant 0 : index
    %c0_3 = arith.constant 0 : index
    %2 = vector.load %arg2[%c0_2, %c0_3] : memref<32x16xbf16, #tpu.memory_space<vmem>>, vector<32x16xbf16>
    %cst = arith.constant dense<0.000000e+00> : vector<15x16xf32>
    %3 = tpu.matmul %1, %2, %cst {dimension_numbers = #tpu.dot_dimension_numbers<[1], [0], [0], [1], [0, 0, 1, 1], [], []>} : vector<15x32xbf16>, vector<32x16xbf16>, vector<15x16xf32> -> vector<15x16xf32>
    %4 = arith.mulf %3, %3 : vector<15x16xf32>
    %5 = arith.mulf %3, %4 : vector<15x16xf32>
    %cst_4 = arith.constant 4.471500e-02 : f32
    %6 = vector.broadcast %cst_4 : f32 to vector<15x16xf32>
    %7 = arith.mulf %6, %5 : vector<15x16xf32>
    %8 = arith.addf %3, %7 : vector<15x16xf32>
    %cst_5 = arith.constant 0.797884583 : f32
    %9 = vector.broadcast %cst_5 : f32 to vector<15x16xf32>
    %10 = arith.mulf %9, %8 : vector<15x16xf32>
    %11 = math.tanh %10 : vector<15x16xf32>
    %cst_6 = arith.constant 1.000000e+00 : f32
    %12 = vector.broadcast %cst_6 : f32 to vector<15x16xf32>
    %13 = arith.addf %12, %11 : vector<15x16xf32>
    %cst_7 = arith.constant 5.000000e-01 : f32
    %14 = vector.broadcast %cst_7 : f32 to vector<15x16xf32>
    %15 = arith.mulf %14, %13 : vector<15x16xf32>
    %16 = arith.mulf %3, %15 : vector<15x16xf32>
    %c0_8 = arith.constant 0 : index
    %c0_9 = arith.constant 0 : index
    %17 = vector.load %arg3[%c0_8, %c0_9] : memref<1x16xf32, #tpu.memory_space<vmem>>, vector<1x16xf32>
    %c0_10 = arith.constant 0 : index
    %c0_11 = arith.constant 0 : index
    %18 = vector.load %arg4[%c0_10, %c0_11] : memref<1x16xf32, #tpu.memory_space<vmem>>, vector<1x16xf32>
    %cst_12 = arith.constant dense<0.000000e+00> : vector<15xf32>
    %19 = vector.multi_reduction <add>, %16, %cst_12 [1] : vector<15x16xf32> to vector<15xf32>
    %20 = vector.shape_cast %19 : vector<15xf32> to vector<15x1xf32>
    %cst_13 = arith.constant 1.600000e+01 : f32
    %21 = vector.broadcast %cst_13 : f32 to vector<15x1xf32>
    %22 = arith.divf %20, %21 : vector<15x1xf32>
    %23 = vector.broadcast %22 : vector<15x1xf32> to vector<15x16xf32>
    %24 = arith.subf %16, %23 : vector<15x16xf32>
    %25 = arith.mulf %24, %24 : vector<15x16xf32>
    %cst_14 = arith.constant dense<0.000000e+00> : vector<15xf32>
    %26 = vector.multi_reduction <add>, %25, %cst_14 [1] : vector<15x16xf32> to vector<15xf32>
    %27 = vector.shape_cast %26 : vector<15xf32> to vector<15x1xf32>
    %cst_15 = arith.constant 1.600000e+01 : f32
    %28 = vector.broadcast %cst_15 : f32 to vector<15x1xf32>
    %29 = arith.divf %27, %28 : vector<15x1xf32>
    %30 = vector.broadcast %22 : vector<15x1xf32> to vector<15x16xf32>
    %31 = arith.subf %16, %30 : vector<15x16xf32>
    %cst_16 = arith.constant 9.99999974E-6 : f32
    %32 = vector.broadcast %cst_16 : f32 to vector<15x1xf32>
    %33 = arith.addf %29, %32 : vector<15x1xf32>
    %34 = math.rsqrt %33 : vector<15x1xf32>
    %35 = vector.broadcast %34 : vector<15x1xf32> to vector<15x16xf32>
    %36 = arith.mulf %31, %35 : vector<15x16xf32>
    %37 = vector.broadcast %17 : vector<1x16xf32> to vector<15x16xf32>
    %38 = arith.mulf %36, %37 : vector<15x16xf32>
    %39 = vector.broadcast %18 : vector<1x16xf32> to vector<15x16xf32>
    %40 = arith.addf %38, %39 : vector<15x16xf32>
    %41 = arith.truncf %40 : vector<15x16xf32> to vector<15x16xbf16>
    %c0_17 = arith.constant 0 : index
    %c0_18 = arith.constant 0 : index
    %42 = vector.load %arg5[%c0_17, %c0_18] : memref<16x32xbf16, #tpu.memory_space<vmem>>, vector<16x32xbf16>
    %cst_19 = arith.constant dense<0.000000e+00> : vector<15x32xf32>
    %43 = tpu.matmul %41, %42, %cst_19 {dimension_numbers = #tpu.dot_dimension_numbers<[1], [0], [0], [1], [0, 0, 1, 1], [], []>} : vector<15x16xbf16>, vector<16x32xbf16>, vector<15x32xf32> -> vector<15x32xf32>
    %c0_20 = arith.constant 0 : index
    %c0_21 = arith.constant 0 : index
    %44 = vector.load %arg6[%c0_20, %c0_21] : memref<1x32xf32, #tpu.memory_space<vmem>>, vector<1x32xf32>
    %45 = vector.broadcast %44 : vector<1x32xf32> to vector<15x32xf32>
    %46 = arith.addf %43, %45 : vector<15x32xf32>
    %47 = arith.truncf %46 : vector<15x32xf32> to vector<15x32xbf16>
    %c0_22 = arith.constant 0 : index
    %c0_23 = arith.constant 0 : index
    %c0_24 = arith.constant 0 : index
    %48 = vector.load %arg7[%c0_22, %c0_23, %c0_24] : memref<1x15x32xbf16, #tpu.memory_space<vmem>>, vector<1x15x32xbf16>
    %49 = vector.shape_cast %48 : vector<1x15x32xbf16> to vector<15x32xbf16>
    %50 = vector.shape_cast %47 : vector<15x32xbf16> to vector<1x15x32xbf16>
    tpu.vector_store %arg7[%c0_22, %c0_23, %c0_24], %50 {strides = array<i32>} : memref<1x15x32xbf16, #tpu.memory_space<vmem>>, vector<1x15x32xbf16>,
    return
  }
  func.func @transform_0(%arg0: i32) -> (i32, i32, i32) {
    %c0_i32 = arith.constant 0 : i32
    %c0_i32_0 = arith.constant 0 : i32
    %c0_i32_1 = arith.constant 0 : i32
    return %arg0, %c0_i32, %c0_i32_0 : i32, i32, i32
  }
  func.func @transform_1(%arg0: i32) -> (i32, i32) {
    %c0_i32 = arith.constant 0 : i32
    %c0_i32_0 = arith.constant 0 : i32
    %c0_i32_1 = arith.constant 0 : i32
    return %c0_i32, %c0_i32_0 : i32, i32
  }
  func.func @transform_2(%arg0: i32) -> (i32, i32) {
    %c0_i32 = arith.constant 0 : i32
    %c0_i32_0 = arith.constant 0 : i32
    %c0_i32_1 = arith.constant 0 : i32
    return %c0_i32, %c0_i32_0 : i32, i32
  }
  func.func @transform_3(%arg0: i32) -> (i32, i32) {
    %c0_i32 = arith.constant 0 : i32
    %c0_i32_0 = arith.constant 0 : i32
    %c0_i32_1 = arith.constant 0 : i32
    return %c0_i32, %c0_i32_0 : i32, i32
  }
  func.func @transform_4(%arg0: i32) -> (i32, i32) {
    %c0_i32 = arith.constant 0 : i32
    %c0_i32_0 = arith.constant 0 : i32
    %c0_i32_1 = arith.constant 0 : i32
    return %c0_i32, %c0_i32_0 : i32, i32
  }
  func.func @transform_5(%arg0: i32) -> (i32, i32) {
    %c0_i32 = arith.constant 0 : i32
    %c0_i32_0 = arith.constant 0 : i32
    %c0_i32_1 = arith.constant 0 : i32
    return %c0_i32, %c0_i32_0 : i32, i32
  }
  func.func @transform_6(%arg0: i32) -> (i32, i32, i32) {
    %c0_i32 = arith.constant 0 : i32
    %c0_i32_0 = arith.constant 0 : i32
    %c0_i32_1 = arith.constant 0 : i32
    return %arg0, %c0_i32, %c0_i32_0 : i32, i32, i32
  }
}

module attributes {stable_mosaic.version = 11 : i64} {
  func.func @_posconv_add_ln_kernel(%arg0: i32, %arg1: memref<1x19x32xbf16, #tpu.memory_space<vmem>>, %arg2: memref<2x4x16x16xbf16, #tpu.memory_space<vmem>>, %arg3: memref<1x32xf32, #tpu.memory_space<vmem>>, %arg4: memref<1x32xf32, #tpu.memory_space<vmem>>, %arg5: memref<1x32xf32, #tpu.memory_space<vmem>>, %arg6: memref<1x15x32xbf16, #tpu.memory_space<vmem>>) attributes {dimension_semantics = [#tpu.dimension_semantics<parallel>], iteration_bounds = array<i64: 2>, scalar_prefetch = 0 : i64, scratch_operands = 0 : i64, tpu.core_type = #tpu.core_type<tc>, window_params = [{transform_indices = @transform_0, window_bounds = array<i64: 1, 19, 32>}, {pipeline_mode = #tpu.pipeline_mode<synchronous>, transform_indices = @transform_1, window_bounds = array<i64: 2, 4, 16, 16>}, {pipeline_mode = #tpu.pipeline_mode<synchronous>, transform_indices = @transform_2, window_bounds = array<i64: 1, 32>}, {pipeline_mode = #tpu.pipeline_mode<synchronous>, transform_indices = @transform_3, window_bounds = array<i64: 1, 32>}, {pipeline_mode = #tpu.pipeline_mode<synchronous>, transform_indices = @transform_4, window_bounds = array<i64: 1, 32>}, {transform_indices = @transform_5, window_bounds = array<i64: 1, 15, 32>}]} {
    %c0 = arith.constant 0 : index
    %c2 = arith.constant 2 : index
    %c0_0 = arith.constant 0 : index
    %0 = vector.load %arg1[%c0, %c2, %c0_0] : memref<1x19x32xbf16, #tpu.memory_space<vmem>>, vector<1x15x32xbf16>
    %1 = vector.shape_cast %0 : vector<1x15x32xbf16> to vector<15x32xbf16>
    %2 = arith.extf %1 : vector<15x32xbf16> to vector<15x32xf32>
    %cst = arith.constant 0.000000e+00 : f32
    %3 = vector.broadcast %cst : f32 to vector<15x16xf32>
    %cst_1 = arith.constant 0.000000e+00 : f32
    %4 = vector.broadcast %cst_1 : f32 to vector<15x16xf32>
    %c0_2 = arith.constant 0 : index
    %c0_3 = arith.constant 0 : index
    %c0_4 = arith.constant 0 : index
    %5 = vector.load %arg1[%c0_2, %c0_3, %c0_4] : memref<1x19x32xbf16, #tpu.memory_space<vmem>>, vector<1x15x32xbf16>
    %6 = vector.shape_cast %5 : vector<1x15x32xbf16> to vector<15x32xbf16>
    %7 = vector.extract_strided_slice %6 {offsets = [0, 0], sizes = [15, 16], strides = [1, 1]} : vector<15x32xbf16> to vector<15x16xbf16>
    %c0_5 = arith.constant 0 : index
    %c0_6 = arith.constant 0 : index
    %c0_7 = arith.constant 0 : index
    %c0_8 = arith.constant 0 : index
    %8 = vector.load %arg2[%c0_5, %c0_6, %c0_7, %c0_8] : memref<2x4x16x16xbf16, #tpu.memory_space<vmem>>, vector<1x1x16x16xbf16>
    %9 = vector.shape_cast %8 : vector<1x1x16x16xbf16> to vector<16x16xbf16>
    %cst_9 = arith.constant dense<0.000000e+00> : vector<15x16xf32>
    %10 = tpu.matmul %7, %9, %cst_9 {dimension_numbers = #tpu.dot_dimension_numbers<[1], [0], [0], [1], [0, 0, 1, 1], [], []>} : vector<15x16xbf16>, vector<16x16xbf16>, vector<15x16xf32> -> vector<15x16xf32>
    %11 = arith.addf %3, %10 : vector<15x16xf32>
    %12 = vector.extract_strided_slice %6 {offsets = [0, 16], sizes = [15, 16], strides = [1, 1]} : vector<15x32xbf16> to vector<15x16xbf16>
    %c1 = arith.constant 1 : index
    %c0_10 = arith.constant 0 : index
    %c0_11 = arith.constant 0 : index
    %c0_12 = arith.constant 0 : index
    %13 = vector.load %arg2[%c1, %c0_10, %c0_11, %c0_12] : memref<2x4x16x16xbf16, #tpu.memory_space<vmem>>, vector<1x1x16x16xbf16>
    %14 = vector.shape_cast %13 : vector<1x1x16x16xbf16> to vector<16x16xbf16>
    %cst_13 = arith.constant dense<0.000000e+00> : vector<15x16xf32>
    %15 = tpu.matmul %12, %14, %cst_13 {dimension_numbers = #tpu.dot_dimension_numbers<[1], [0], [0], [1], [0, 0, 1, 1], [], []>} : vector<15x16xbf16>, vector<16x16xbf16>, vector<15x16xf32> -> vector<15x16xf32>
    %16 = arith.addf %4, %15 : vector<15x16xf32>
    %c0_14 = arith.constant 0 : index
    %c1_15 = arith.constant 1 : index
    %c0_16 = arith.constant 0 : index
    %17 = vector.load %arg1[%c0_14, %c1_15, %c0_16] : memref<1x19x32xbf16, #tpu.memory_space<vmem>>, vector<1x15x32xbf16>
    %18 = vector.shape_cast %17 : vector<1x15x32xbf16> to vector<15x32xbf16>
    %19 = vector.extract_strided_slice %18 {offsets = [0, 0], sizes = [15, 16], strides = [1, 1]} : vector<15x32xbf16> to vector<15x16xbf16>
    %c0_17 = arith.constant 0 : index
    %c1_18 = arith.constant 1 : index
    %c0_19 = arith.constant 0 : index
    %c0_20 = arith.constant 0 : index
    %20 = vector.load %arg2[%c0_17, %c1_18, %c0_19, %c0_20] : memref<2x4x16x16xbf16, #tpu.memory_space<vmem>>, vector<1x1x16x16xbf16>
    %21 = vector.shape_cast %20 : vector<1x1x16x16xbf16> to vector<16x16xbf16>
    %cst_21 = arith.constant dense<0.000000e+00> : vector<15x16xf32>
    %22 = tpu.matmul %19, %21, %cst_21 {dimension_numbers = #tpu.dot_dimension_numbers<[1], [0], [0], [1], [0, 0, 1, 1], [], []>} : vector<15x16xbf16>, vector<16x16xbf16>, vector<15x16xf32> -> vector<15x16xf32>
    %23 = arith.addf %11, %22 : vector<15x16xf32>
    %24 = vector.extract_strided_slice %18 {offsets = [0, 16], sizes = [15, 16], strides = [1, 1]} : vector<15x32xbf16> to vector<15x16xbf16>
    %c1_22 = arith.constant 1 : index
    %c1_23 = arith.constant 1 : index
    %c0_24 = arith.constant 0 : index
    %c0_25 = arith.constant 0 : index
    %25 = vector.load %arg2[%c1_22, %c1_23, %c0_24, %c0_25] : memref<2x4x16x16xbf16, #tpu.memory_space<vmem>>, vector<1x1x16x16xbf16>
    %26 = vector.shape_cast %25 : vector<1x1x16x16xbf16> to vector<16x16xbf16>
    %cst_26 = arith.constant dense<0.000000e+00> : vector<15x16xf32>
    %27 = tpu.matmul %24, %26, %cst_26 {dimension_numbers = #tpu.dot_dimension_numbers<[1], [0], [0], [1], [0, 0, 1, 1], [], []>} : vector<15x16xbf16>, vector<16x16xbf16>, vector<15x16xf32> -> vector<15x16xf32>
    %28 = arith.addf %16, %27 : vector<15x16xf32>
    %c0_27 = arith.constant 0 : index
    %c2_28 = arith.constant 2 : index
    %c0_29 = arith.constant 0 : index
    %29 = vector.load %arg1[%c0_27, %c2_28, %c0_29] : memref<1x19x32xbf16, #tpu.memory_space<vmem>>, vector<1x15x32xbf16>
    %30 = vector.shape_cast %29 : vector<1x15x32xbf16> to vector<15x32xbf16>
    %31 = vector.extract_strided_slice %30 {offsets = [0, 0], sizes = [15, 16], strides = [1, 1]} : vector<15x32xbf16> to vector<15x16xbf16>
    %c0_30 = arith.constant 0 : index
    %c2_31 = arith.constant 2 : index
    %c0_32 = arith.constant 0 : index
    %c0_33 = arith.constant 0 : index
    %32 = vector.load %arg2[%c0_30, %c2_31, %c0_32, %c0_33] : memref<2x4x16x16xbf16, #tpu.memory_space<vmem>>, vector<1x1x16x16xbf16>
    %33 = vector.shape_cast %32 : vector<1x1x16x16xbf16> to vector<16x16xbf16>
    %cst_34 = arith.constant dense<0.000000e+00> : vector<15x16xf32>
    %34 = tpu.matmul %31, %33, %cst_34 {dimension_numbers = #tpu.dot_dimension_numbers<[1], [0], [0], [1], [0, 0, 1, 1], [], []>} : vector<15x16xbf16>, vector<16x16xbf16>, vector<15x16xf32> -> vector<15x16xf32>
    %35 = arith.addf %23, %34 : vector<15x16xf32>
    %36 = vector.extract_strided_slice %30 {offsets = [0, 16], sizes = [15, 16], strides = [1, 1]} : vector<15x32xbf16> to vector<15x16xbf16>
    %c1_35 = arith.constant 1 : index
    %c2_36 = arith.constant 2 : index
    %c0_37 = arith.constant 0 : index
    %c0_38 = arith.constant 0 : index
    %37 = vector.load %arg2[%c1_35, %c2_36, %c0_37, %c0_38] : memref<2x4x16x16xbf16, #tpu.memory_space<vmem>>, vector<1x1x16x16xbf16>
    %38 = vector.shape_cast %37 : vector<1x1x16x16xbf16> to vector<16x16xbf16>
    %cst_39 = arith.constant dense<0.000000e+00> : vector<15x16xf32>
    %39 = tpu.matmul %36, %38, %cst_39 {dimension_numbers = #tpu.dot_dimension_numbers<[1], [0], [0], [1], [0, 0, 1, 1], [], []>} : vector<15x16xbf16>, vector<16x16xbf16>, vector<15x16xf32> -> vector<15x16xf32>
    %40 = arith.addf %28, %39 : vector<15x16xf32>
    %c0_40 = arith.constant 0 : index
    %c3 = arith.constant 3 : index
    %c0_41 = arith.constant 0 : index
    %41 = vector.load %arg1[%c0_40, %c3, %c0_41] : memref<1x19x32xbf16, #tpu.memory_space<vmem>>, vector<1x15x32xbf16>
    %42 = vector.shape_cast %41 : vector<1x15x32xbf16> to vector<15x32xbf16>
    %43 = vector.extract_strided_slice %42 {offsets = [0, 0], sizes = [15, 16], strides = [1, 1]} : vector<15x32xbf16> to vector<15x16xbf16>
    %c0_42 = arith.constant 0 : index
    %c3_43 = arith.constant 3 : index
    %c0_44 = arith.constant 0 : index
    %c0_45 = arith.constant 0 : index
    %44 = vector.load %arg2[%c0_42, %c3_43, %c0_44, %c0_45] : memref<2x4x16x16xbf16, #tpu.memory_space<vmem>>, vector<1x1x16x16xbf16>
    %45 = vector.shape_cast %44 : vector<1x1x16x16xbf16> to vector<16x16xbf16>
    %cst_46 = arith.constant dense<0.000000e+00> : vector<15x16xf32>
    %46 = tpu.matmul %43, %45, %cst_46 {dimension_numbers = #tpu.dot_dimension_numbers<[1], [0], [0], [1], [0, 0, 1, 1], [], []>} : vector<15x16xbf16>, vector<16x16xbf16>, vector<15x16xf32> -> vector<15x16xf32>
    %47 = arith.addf %35, %46 : vector<15x16xf32>
    %48 = vector.extract_strided_slice %42 {offsets = [0, 16], sizes = [15, 16], strides = [1, 1]} : vector<15x32xbf16> to vector<15x16xbf16>
    %c1_47 = arith.constant 1 : index
    %c3_48 = arith.constant 3 : index
    %c0_49 = arith.constant 0 : index
    %c0_50 = arith.constant 0 : index
    %49 = vector.load %arg2[%c1_47, %c3_48, %c0_49, %c0_50] : memref<2x4x16x16xbf16, #tpu.memory_space<vmem>>, vector<1x1x16x16xbf16>
    %50 = vector.shape_cast %49 : vector<1x1x16x16xbf16> to vector<16x16xbf16>
    %cst_51 = arith.constant dense<0.000000e+00> : vector<15x16xf32>
    %51 = tpu.matmul %48, %50, %cst_51 {dimension_numbers = #tpu.dot_dimension_numbers<[1], [0], [0], [1], [0, 0, 1, 1], [], []>} : vector<15x16xbf16>, vector<16x16xbf16>, vector<15x16xf32> -> vector<15x16xf32>
    %52 = arith.addf %40, %51 : vector<15x16xf32>
    %53 = tpu.concatenate %47, %52 in 1 : vector<15x16xf32>, vector<15x16xf32> -> vector<15x32xf32>
    %c0_52 = arith.constant 0 : index
    %c0_53 = arith.constant 0 : index
    %54 = vector.load %arg3[%c0_52, %c0_53] : memref<1x32xf32, #tpu.memory_space<vmem>>, vector<1x32xf32>
    %55 = vector.broadcast %54 : vector<1x32xf32> to vector<15x32xf32>
    %56 = arith.addf %53, %55 : vector<15x32xf32>
    %57 = arith.mulf %56, %56 : vector<15x32xf32>
    %58 = arith.mulf %56, %57 : vector<15x32xf32>
    %cst_54 = arith.constant 4.471500e-02 : f32
    %59 = vector.broadcast %cst_54 : f32 to vector<15x32xf32>
    %60 = arith.mulf %59, %58 : vector<15x32xf32>
    %61 = arith.addf %56, %60 : vector<15x32xf32>
    %cst_55 = arith.constant 0.797884583 : f32
    %62 = vector.broadcast %cst_55 : f32 to vector<15x32xf32>
    %63 = arith.mulf %62, %61 : vector<15x32xf32>
    %64 = math.tanh %63 : vector<15x32xf32>
    %cst_56 = arith.constant 1.000000e+00 : f32
    %65 = vector.broadcast %cst_56 : f32 to vector<15x32xf32>
    %66 = arith.addf %65, %64 : vector<15x32xf32>
    %cst_57 = arith.constant 5.000000e-01 : f32
    %67 = vector.broadcast %cst_57 : f32 to vector<15x32xf32>
    %68 = arith.mulf %67, %66 : vector<15x32xf32>
    %69 = arith.mulf %56, %68 : vector<15x32xf32>
    %70 = arith.addf %2, %69 : vector<15x32xf32>
    %c0_58 = arith.constant 0 : index
    %c0_59 = arith.constant 0 : index
    %71 = vector.load %arg4[%c0_58, %c0_59] : memref<1x32xf32, #tpu.memory_space<vmem>>, vector<1x32xf32>
    %c0_60 = arith.constant 0 : index
    %c0_61 = arith.constant 0 : index
    %72 = vector.load %arg5[%c0_60, %c0_61] : memref<1x32xf32, #tpu.memory_space<vmem>>, vector<1x32xf32>
    %cst_62 = arith.constant dense<0.000000e+00> : vector<15xf32>
    %73 = vector.multi_reduction <add>, %70, %cst_62 [1] : vector<15x32xf32> to vector<15xf32>
    %74 = vector.shape_cast %73 : vector<15xf32> to vector<15x1xf32>
    %cst_63 = arith.constant 3.200000e+01 : f32
    %75 = vector.broadcast %cst_63 : f32 to vector<15x1xf32>
    %76 = arith.divf %74, %75 : vector<15x1xf32>
    %77 = vector.broadcast %76 : vector<15x1xf32> to vector<15x32xf32>
    %78 = arith.subf %70, %77 : vector<15x32xf32>
    %79 = arith.mulf %78, %78 : vector<15x32xf32>
    %cst_64 = arith.constant dense<0.000000e+00> : vector<15xf32>
    %80 = vector.multi_reduction <add>, %79, %cst_64 [1] : vector<15x32xf32> to vector<15xf32>
    %81 = vector.shape_cast %80 : vector<15xf32> to vector<15x1xf32>
    %cst_65 = arith.constant 3.200000e+01 : f32
    %82 = vector.broadcast %cst_65 : f32 to vector<15x1xf32>
    %83 = arith.divf %81, %82 : vector<15x1xf32>
    %84 = vector.broadcast %76 : vector<15x1xf32> to vector<15x32xf32>
    %85 = arith.subf %70, %84 : vector<15x32xf32>
    %cst_66 = arith.constant 9.99999974E-6 : f32
    %86 = vector.broadcast %cst_66 : f32 to vector<15x1xf32>
    %87 = arith.addf %83, %86 : vector<15x1xf32>
    %88 = math.rsqrt %87 : vector<15x1xf32>
    %89 = vector.broadcast %88 : vector<15x1xf32> to vector<15x32xf32>
    %90 = arith.mulf %85, %89 : vector<15x32xf32>
    %91 = vector.broadcast %71 : vector<1x32xf32> to vector<15x32xf32>
    %92 = arith.mulf %90, %91 : vector<15x32xf32>
    %93 = vector.broadcast %72 : vector<1x32xf32> to vector<15x32xf32>
    %94 = arith.addf %92, %93 : vector<15x32xf32>
    %95 = arith.truncf %94 : vector<15x32xf32> to vector<15x32xbf16>
    %c0_67 = arith.constant 0 : index
    %c0_68 = arith.constant 0 : index
    %c0_69 = arith.constant 0 : index
    %96 = vector.load %arg6[%c0_67, %c0_68, %c0_69] : memref<1x15x32xbf16, #tpu.memory_space<vmem>>, vector<1x15x32xbf16>
    %97 = vector.shape_cast %96 : vector<1x15x32xbf16> to vector<15x32xbf16>
    %98 = vector.shape_cast %95 : vector<15x32xbf16> to vector<1x15x32xbf16>
    tpu.vector_store %arg6[%c0_67, %c0_68, %c0_69], %98 {strides = array<i32>} : memref<1x15x32xbf16, #tpu.memory_space<vmem>>, vector<1x15x32xbf16>,
    return
  }
  func.func @transform_0(%arg0: i32) -> (i32, i32, i32) {
    %c0_i32 = arith.constant 0 : i32
    %c0_i32_0 = arith.constant 0 : i32
    %c0_i32_1 = arith.constant 0 : i32
    return %arg0, %c0_i32, %c0_i32_0 : i32, i32, i32
  }
  func.func @transform_1(%arg0: i32) -> (i32, i32, i32, i32) {
    %c0_i32 = arith.constant 0 : i32
    %c0_i32_0 = arith.constant 0 : i32
    %c0_i32_1 = arith.constant 0 : i32
    %c0_i32_2 = arith.constant 0 : i32
    %c0_i32_3 = arith.constant 0 : i32
    return %c0_i32, %c0_i32_0, %c0_i32_1, %c0_i32_2 : i32, i32, i32, i32
  }
  func.func @transform_2(%arg0: i32) -> (i32, i32) {
    %c0_i32 = arith.constant 0 : i32
    %c0_i32_0 = arith.constant 0 : i32
    %c0_i32_1 = arith.constant 0 : i32
    return %c0_i32, %c0_i32_0 : i32, i32
  }
  func.func @transform_3(%arg0: i32) -> (i32, i32) {
    %c0_i32 = arith.constant 0 : i32
    %c0_i32_0 = arith.constant 0 : i32
    %c0_i32_1 = arith.constant 0 : i32
    return %c0_i32, %c0_i32_0 : i32, i32
  }
  func.func @transform_4(%arg0: i32) -> (i32, i32) {
    %c0_i32 = arith.constant 0 : i32
    %c0_i32_0 = arith.constant 0 : i32
    %c0_i32_1 = arith.constant 0 : i32
    return %c0_i32, %c0_i32_0 : i32, i32
  }
  func.func @transform_5(%arg0: i32) -> (i32, i32, i32) {
    %c0_i32 = arith.constant 0 : i32
    %c0_i32_0 = arith.constant 0 : i32
    %c0_i32_1 = arith.constant 0 : i32
    return %arg0, %c0_i32, %c0_i32_0 : i32, i32, i32
  }
}

module attributes {stable_mosaic.version = 11 : i64} {
  func.func @_encoder_layer_kernel(%arg0: i32, %arg1: memref<1x15x32xbf16, #tpu.memory_space<vmem>>, %arg2: memref<32x96xbf16, #tpu.memory_space<vmem>>, %arg3: memref<1x96xf32, #tpu.memory_space<vmem>>, %arg4: memref<32x32xbf16, #tpu.memory_space<vmem>>, %arg5: memref<1x32xf32, #tpu.memory_space<vmem>>, %arg6: memref<1x32xf32, #tpu.memory_space<vmem>>, %arg7: memref<1x32xf32, #tpu.memory_space<vmem>>, %arg8: memref<32x64xbf16, #tpu.memory_space<vmem>>, %arg9: memref<1x64xf32, #tpu.memory_space<vmem>>, %arg10: memref<64x32xbf16, #tpu.memory_space<vmem>>, %arg11: memref<1x32xf32, #tpu.memory_space<vmem>>, %arg12: memref<1x32xf32, #tpu.memory_space<vmem>>, %arg13: memref<1x32xf32, #tpu.memory_space<vmem>>, %arg14: memref<1x15x32xbf16, #tpu.memory_space<vmem>>) attributes {dimension_semantics = [#tpu.dimension_semantics<parallel>], iteration_bounds = array<i64: 2>, scalar_prefetch = 0 : i64, scratch_operands = 0 : i64, tpu.core_type = #tpu.core_type<tc>, window_params = [{transform_indices = @transform_0, window_bounds = array<i64: 1, 15, 32>}, {pipeline_mode = #tpu.pipeline_mode<synchronous>, transform_indices = @transform_1, window_bounds = array<i64: 32, 96>}, {pipeline_mode = #tpu.pipeline_mode<synchronous>, transform_indices = @transform_2, window_bounds = array<i64: 1, 96>}, {pipeline_mode = #tpu.pipeline_mode<synchronous>, transform_indices = @transform_3, window_bounds = array<i64: 32, 32>}, {pipeline_mode = #tpu.pipeline_mode<synchronous>, transform_indices = @transform_4, window_bounds = array<i64: 1, 32>}, {pipeline_mode = #tpu.pipeline_mode<synchronous>, transform_indices = @transform_5, window_bounds = array<i64: 1, 32>}, {pipeline_mode = #tpu.pipeline_mode<synchronous>, transform_indices = @transform_6, window_bounds = array<i64: 1, 32>}, {pipeline_mode = #tpu.pipeline_mode<synchronous>, transform_indices = @transform_7, window_bounds = array<i64: 32, 64>}, {pipeline_mode = #tpu.pipeline_mode<synchronous>, transform_indices = @transform_8, window_bounds = array<i64: 1, 64>}, {pipeline_mode = #tpu.pipeline_mode<synchronous>, transform_indices = @transform_9, window_bounds = array<i64: 64, 32>}, {pipeline_mode = #tpu.pipeline_mode<synchronous>, transform_indices = @transform_10, window_bounds = array<i64: 1, 32>}, {pipeline_mode = #tpu.pipeline_mode<synchronous>, transform_indices = @transform_11, window_bounds = array<i64: 1, 32>}, {pipeline_mode = #tpu.pipeline_mode<synchronous>, transform_indices = @transform_12, window_bounds = array<i64: 1, 32>}, {transform_indices = @transform_13, window_bounds = array<i64: 1, 15, 32>}]} {
    %c0 = arith.constant 0 : index
    %c0_0 = arith.constant 0 : index
    %c0_1 = arith.constant 0 : index
    %0 = vector.load %arg1[%c0, %c0_0, %c0_1] : memref<1x15x32xbf16, #tpu.memory_space<vmem>>, vector<1x15x32xbf16>
    %1 = vector.shape_cast %0 : vector<1x15x32xbf16> to vector<15x32xbf16>
    %2 = arith.extf %1 : vector<15x32xbf16> to vector<15x32xf32>
    %c0_2 = arith.constant 0 : index
    %c0_3 = arith.constant 0 : index
    %3 = vector.load %arg2[%c0_2, %c0_3] : memref<32x96xbf16, #tpu.memory_space<vmem>>, vector<32x96xbf16>
    %cst = arith.constant dense<0.000000e+00> : vector<15x96xf32>
    %4 = tpu.matmul %1, %3, %cst {dimension_numbers = #tpu.dot_dimension_numbers<[1], [0], [0], [1], [0, 0, 1, 1], [], []>} : vector<15x32xbf16>, vector<32x96xbf16>, vector<15x96xf32> -> vector<15x96xf32>
    %c0_4 = arith.constant 0 : index
    %c0_5 = arith.constant 0 : index
    %5 = vector.load %arg3[%c0_4, %c0_5] : memref<1x96xf32, #tpu.memory_space<vmem>>, vector<1x96xf32>
    %6 = vector.broadcast %5 : vector<1x96xf32> to vector<15x96xf32>
    %7 = arith.addf %4, %6 : vector<15x96xf32>
    %8 = vector.extract_strided_slice %7 {offsets = [0, 0], sizes = [15, 8], strides = [1, 1]} : vector<15x96xf32> to vector<15x8xf32>
    %cst_6 = arith.constant 0.353553385 : f32
    %9 = vector.broadcast %cst_6 : f32 to vector<15x8xf32>
    %10 = arith.mulf %8, %9 : vector<15x8xf32>
    %11 = arith.truncf %10 : vector<15x8xf32> to vector<15x8xbf16>
    %12 = vector.extract_strided_slice %7 {offsets = [0, 32], sizes = [15, 8], strides = [1, 1]} : vector<15x96xf32> to vector<15x8xf32>
    %13 = arith.truncf %12 : vector<15x8xf32> to vector<15x8xbf16>
    %14 = vector.extract_strided_slice %7 {offsets = [0, 64], sizes = [15, 8], strides = [1, 1]} : vector<15x96xf32> to vector<15x8xf32>
    %15 = arith.truncf %14 : vector<15x8xf32> to vector<15x8xbf16>
    %cst_7 = arith.constant dense<0.000000e+00> : vector<15x15xf32>
    %16 = tpu.matmul %11, %13, %cst_7 {dimension_numbers = #tpu.dot_dimension_numbers<[1], [1], [0], [0], [0, 0, 1, 0], [], []>} : vector<15x8xbf16>, vector<15x8xbf16>, vector<15x15xf32> -> vector<15x15xf32>
    %cst_8 = arith.constant dense<0xFF800000> : vector<15xf32>
    %17 = vector.multi_reduction <maximumf>, %16, %cst_8 [1] : vector<15x15xf32> to vector<15xf32>
    %18 = vector.shape_cast %17 : vector<15xf32> to vector<15x1xf32>
    %19 = vector.broadcast %18 : vector<15x1xf32> to vector<15x15xf32>
    %20 = arith.subf %16, %19 : vector<15x15xf32>
    %21 = math.exp %20 : vector<15x15xf32>
    %cst_9 = arith.constant dense<0.000000e+00> : vector<15xf32>
    %22 = vector.multi_reduction <add>, %21, %cst_9 [1] : vector<15x15xf32> to vector<15xf32>
    %23 = vector.shape_cast %22 : vector<15xf32> to vector<15x1xf32>
    %24 = tpu.reciprocal %23 {approx = true} : vector<15x1xf32> -> vector<15x1xf32>
    %25 = vector.broadcast %24 : vector<15x1xf32> to vector<15x15xf32>
    %26 = arith.mulf %21, %25 : vector<15x15xf32>
    %27 = arith.truncf %26 : vector<15x15xf32> to vector<15x15xbf16>
    %cst_10 = arith.constant dense<0.000000e+00> : vector<15x8xf32>
    %28 = tpu.matmul %27, %15, %cst_10 {dimension_numbers = #tpu.dot_dimension_numbers<[1], [0], [0], [1], [0, 0, 1, 1], [], []>} : vector<15x15xbf16>, vector<15x8xbf16>, vector<15x8xf32> -> vector<15x8xf32>
    %29 = vector.extract_strided_slice %7 {offsets = [0, 8], sizes = [15, 8], strides = [1, 1]} : vector<15x96xf32> to vector<15x8xf32>
    %cst_11 = arith.constant 0.353553385 : f32
    %30 = vector.broadcast %cst_11 : f32 to vector<15x8xf32>
    %31 = arith.mulf %29, %30 : vector<15x8xf32>
    %32 = arith.truncf %31 : vector<15x8xf32> to vector<15x8xbf16>
    %33 = vector.extract_strided_slice %7 {offsets = [0, 40], sizes = [15, 8], strides = [1, 1]} : vector<15x96xf32> to vector<15x8xf32>
    %34 = arith.truncf %33 : vector<15x8xf32> to vector<15x8xbf16>
    %35 = vector.extract_strided_slice %7 {offsets = [0, 72], sizes = [15, 8], strides = [1, 1]} : vector<15x96xf32> to vector<15x8xf32>
    %36 = arith.truncf %35 : vector<15x8xf32> to vector<15x8xbf16>
    %cst_12 = arith.constant dense<0.000000e+00> : vector<15x15xf32>
    %37 = tpu.matmul %32, %34, %cst_12 {dimension_numbers = #tpu.dot_dimension_numbers<[1], [1], [0], [0], [0, 0, 1, 0], [], []>} : vector<15x8xbf16>, vector<15x8xbf16>, vector<15x15xf32> -> vector<15x15xf32>
    %cst_13 = arith.constant dense<0xFF800000> : vector<15xf32>
    %38 = vector.multi_reduction <maximumf>, %37, %cst_13 [1] : vector<15x15xf32> to vector<15xf32>
    %39 = vector.shape_cast %38 : vector<15xf32> to vector<15x1xf32>
    %40 = vector.broadcast %39 : vector<15x1xf32> to vector<15x15xf32>
    %41 = arith.subf %37, %40 : vector<15x15xf32>
    %42 = math.exp %41 : vector<15x15xf32>
    %cst_14 = arith.constant dense<0.000000e+00> : vector<15xf32>
    %43 = vector.multi_reduction <add>, %42, %cst_14 [1] : vector<15x15xf32> to vector<15xf32>
    %44 = vector.shape_cast %43 : vector<15xf32> to vector<15x1xf32>
    %45 = tpu.reciprocal %44 {approx = true} : vector<15x1xf32> -> vector<15x1xf32>
    %46 = vector.broadcast %45 : vector<15x1xf32> to vector<15x15xf32>
    %47 = arith.mulf %42, %46 : vector<15x15xf32>
    %48 = arith.truncf %47 : vector<15x15xf32> to vector<15x15xbf16>
    %cst_15 = arith.constant dense<0.000000e+00> : vector<15x8xf32>
    %49 = tpu.matmul %48, %36, %cst_15 {dimension_numbers = #tpu.dot_dimension_numbers<[1], [0], [0], [1], [0, 0, 1, 1], [], []>} : vector<15x15xbf16>, vector<15x8xbf16>, vector<15x8xf32> -> vector<15x8xf32>
    %50 = vector.extract_strided_slice %7 {offsets = [0, 16], sizes = [15, 8], strides = [1, 1]} : vector<15x96xf32> to vector<15x8xf32>
    %cst_16 = arith.constant 0.353553385 : f32
    %51 = vector.broadcast %cst_16 : f32 to vector<15x8xf32>
    %52 = arith.mulf %50, %51 : vector<15x8xf32>
    %53 = arith.truncf %52 : vector<15x8xf32> to vector<15x8xbf16>
    %54 = vector.extract_strided_slice %7 {offsets = [0, 48], sizes = [15, 8], strides = [1, 1]} : vector<15x96xf32> to vector<15x8xf32>
    %55 = arith.truncf %54 : vector<15x8xf32> to vector<15x8xbf16>
    %56 = vector.extract_strided_slice %7 {offsets = [0, 80], sizes = [15, 8], strides = [1, 1]} : vector<15x96xf32> to vector<15x8xf32>
    %57 = arith.truncf %56 : vector<15x8xf32> to vector<15x8xbf16>
    %cst_17 = arith.constant dense<0.000000e+00> : vector<15x15xf32>
    %58 = tpu.matmul %53, %55, %cst_17 {dimension_numbers = #tpu.dot_dimension_numbers<[1], [1], [0], [0], [0, 0, 1, 0], [], []>} : vector<15x8xbf16>, vector<15x8xbf16>, vector<15x15xf32> -> vector<15x15xf32>
    %cst_18 = arith.constant dense<0xFF800000> : vector<15xf32>
    %59 = vector.multi_reduction <maximumf>, %58, %cst_18 [1] : vector<15x15xf32> to vector<15xf32>
    %60 = vector.shape_cast %59 : vector<15xf32> to vector<15x1xf32>
    %61 = vector.broadcast %60 : vector<15x1xf32> to vector<15x15xf32>
    %62 = arith.subf %58, %61 : vector<15x15xf32>
    %63 = math.exp %62 : vector<15x15xf32>
    %cst_19 = arith.constant dense<0.000000e+00> : vector<15xf32>
    %64 = vector.multi_reduction <add>, %63, %cst_19 [1] : vector<15x15xf32> to vector<15xf32>
    %65 = vector.shape_cast %64 : vector<15xf32> to vector<15x1xf32>
    %66 = tpu.reciprocal %65 {approx = true} : vector<15x1xf32> -> vector<15x1xf32>
    %67 = vector.broadcast %66 : vector<15x1xf32> to vector<15x15xf32>
    %68 = arith.mulf %63, %67 : vector<15x15xf32>
    %69 = arith.truncf %68 : vector<15x15xf32> to vector<15x15xbf16>
    %cst_20 = arith.constant dense<0.000000e+00> : vector<15x8xf32>
    %70 = tpu.matmul %69, %57, %cst_20 {dimension_numbers = #tpu.dot_dimension_numbers<[1], [0], [0], [1], [0, 0, 1, 1], [], []>} : vector<15x15xbf16>, vector<15x8xbf16>, vector<15x8xf32> -> vector<15x8xf32>
    %71 = vector.extract_strided_slice %7 {offsets = [0, 24], sizes = [15, 8], strides = [1, 1]} : vector<15x96xf32> to vector<15x8xf32>
    %cst_21 = arith.constant 0.353553385 : f32
    %72 = vector.broadcast %cst_21 : f32 to vector<15x8xf32>
    %73 = arith.mulf %71, %72 : vector<15x8xf32>
    %74 = arith.truncf %73 : vector<15x8xf32> to vector<15x8xbf16>
    %75 = vector.extract_strided_slice %7 {offsets = [0, 56], sizes = [15, 8], strides = [1, 1]} : vector<15x96xf32> to vector<15x8xf32>
    %76 = arith.truncf %75 : vector<15x8xf32> to vector<15x8xbf16>
    %77 = vector.extract_strided_slice %7 {offsets = [0, 88], sizes = [15, 8], strides = [1, 1]} : vector<15x96xf32> to vector<15x8xf32>
    %78 = arith.truncf %77 : vector<15x8xf32> to vector<15x8xbf16>
    %cst_22 = arith.constant dense<0.000000e+00> : vector<15x15xf32>
    %79 = tpu.matmul %74, %76, %cst_22 {dimension_numbers = #tpu.dot_dimension_numbers<[1], [1], [0], [0], [0, 0, 1, 0], [], []>} : vector<15x8xbf16>, vector<15x8xbf16>, vector<15x15xf32> -> vector<15x15xf32>
    %cst_23 = arith.constant dense<0xFF800000> : vector<15xf32>
    %80 = vector.multi_reduction <maximumf>, %79, %cst_23 [1] : vector<15x15xf32> to vector<15xf32>
    %81 = vector.shape_cast %80 : vector<15xf32> to vector<15x1xf32>
    %82 = vector.broadcast %81 : vector<15x1xf32> to vector<15x15xf32>
    %83 = arith.subf %79, %82 : vector<15x15xf32>
    %84 = math.exp %83 : vector<15x15xf32>
    %cst_24 = arith.constant dense<0.000000e+00> : vector<15xf32>
    %85 = vector.multi_reduction <add>, %84, %cst_24 [1] : vector<15x15xf32> to vector<15xf32>
    %86 = vector.shape_cast %85 : vector<15xf32> to vector<15x1xf32>
    %87 = tpu.reciprocal %86 {approx = true} : vector<15x1xf32> -> vector<15x1xf32>
    %88 = vector.broadcast %87 : vector<15x1xf32> to vector<15x15xf32>
    %89 = arith.mulf %84, %88 : vector<15x15xf32>
    %90 = arith.truncf %89 : vector<15x15xf32> to vector<15x15xbf16>
    %cst_25 = arith.constant dense<0.000000e+00> : vector<15x8xf32>
    %91 = tpu.matmul %90, %78, %cst_25 {dimension_numbers = #tpu.dot_dimension_numbers<[1], [0], [0], [1], [0, 0, 1, 1], [], []>} : vector<15x15xbf16>, vector<15x8xbf16>, vector<15x8xf32> -> vector<15x8xf32>
    %92 = tpu.concatenate %28, %49, %70, %91 in 1 : vector<15x8xf32>, vector<15x8xf32>, vector<15x8xf32>, vector<15x8xf32> -> vector<15x32xf32>
    %93 = arith.truncf %92 : vector<15x32xf32> to vector<15x32xbf16>
    %c0_26 = arith.constant 0 : index
    %c0_27 = arith.constant 0 : index
    %94 = vector.load %arg4[%c0_26, %c0_27] : memref<32x32xbf16, #tpu.memory_space<vmem>>, vector<32x32xbf16>
    %cst_28 = arith.constant dense<0.000000e+00> : vector<15x32xf32>
    %95 = tpu.matmul %93, %94, %cst_28 {dimension_numbers = #tpu.dot_dimension_numbers<[1], [0], [0], [1], [0, 0, 1, 1], [], []>} : vector<15x32xbf16>, vector<32x32xbf16>, vector<15x32xf32> -> vector<15x32xf32>
    %c0_29 = arith.constant 0 : index
    %c0_30 = arith.constant 0 : index
    %96 = vector.load %arg5[%c0_29, %c0_30] : memref<1x32xf32, #tpu.memory_space<vmem>>, vector<1x32xf32>
    %97 = vector.broadcast %96 : vector<1x32xf32> to vector<15x32xf32>
    %98 = arith.addf %95, %97 : vector<15x32xf32>
    %99 = arith.addf %2, %98 : vector<15x32xf32>
    %c0_31 = arith.constant 0 : index
    %c0_32 = arith.constant 0 : index
    %100 = vector.load %arg6[%c0_31, %c0_32] : memref<1x32xf32, #tpu.memory_space<vmem>>, vector<1x32xf32>
    %c0_33 = arith.constant 0 : index
    %c0_34 = arith.constant 0 : index
    %101 = vector.load %arg7[%c0_33, %c0_34] : memref<1x32xf32, #tpu.memory_space<vmem>>, vector<1x32xf32>
    %cst_35 = arith.constant dense<0.000000e+00> : vector<15xf32>
    %102 = vector.multi_reduction <add>, %99, %cst_35 [1] : vector<15x32xf32> to vector<15xf32>
    %103 = vector.shape_cast %102 : vector<15xf32> to vector<15x1xf32>
    %cst_36 = arith.constant 3.200000e+01 : f32
    %104 = vector.broadcast %cst_36 : f32 to vector<15x1xf32>
    %105 = arith.divf %103, %104 : vector<15x1xf32>
    %106 = vector.broadcast %105 : vector<15x1xf32> to vector<15x32xf32>
    %107 = arith.subf %99, %106 : vector<15x32xf32>
    %108 = arith.mulf %107, %107 : vector<15x32xf32>
    %cst_37 = arith.constant dense<0.000000e+00> : vector<15xf32>
    %109 = vector.multi_reduction <add>, %108, %cst_37 [1] : vector<15x32xf32> to vector<15xf32>
    %110 = vector.shape_cast %109 : vector<15xf32> to vector<15x1xf32>
    %cst_38 = arith.constant 3.200000e+01 : f32
    %111 = vector.broadcast %cst_38 : f32 to vector<15x1xf32>
    %112 = arith.divf %110, %111 : vector<15x1xf32>
    %113 = vector.broadcast %105 : vector<15x1xf32> to vector<15x32xf32>
    %114 = arith.subf %99, %113 : vector<15x32xf32>
    %cst_39 = arith.constant 9.99999974E-6 : f32
    %115 = vector.broadcast %cst_39 : f32 to vector<15x1xf32>
    %116 = arith.addf %112, %115 : vector<15x1xf32>
    %117 = math.rsqrt %116 : vector<15x1xf32>
    %118 = vector.broadcast %117 : vector<15x1xf32> to vector<15x32xf32>
    %119 = arith.mulf %114, %118 : vector<15x32xf32>
    %120 = vector.broadcast %100 : vector<1x32xf32> to vector<15x32xf32>
    %121 = arith.mulf %119, %120 : vector<15x32xf32>
    %122 = vector.broadcast %101 : vector<1x32xf32> to vector<15x32xf32>
    %123 = arith.addf %121, %122 : vector<15x32xf32>
    %124 = arith.truncf %123 : vector<15x32xf32> to vector<15x32xbf16>
    %c0_40 = arith.constant 0 : index
    %c0_41 = arith.constant 0 : index
    %125 = vector.load %arg8[%c0_40, %c0_41] : memref<32x64xbf16, #tpu.memory_space<vmem>>, vector<32x64xbf16>
    %cst_42 = arith.constant dense<0.000000e+00> : vector<15x64xf32>
    %126 = tpu.matmul %124, %125, %cst_42 {dimension_numbers = #tpu.dot_dimension_numbers<[1], [0], [0], [1], [0, 0, 1, 1], [], []>} : vector<15x32xbf16>, vector<32x64xbf16>, vector<15x64xf32> -> vector<15x64xf32>
    %c0_43 = arith.constant 0 : index
    %c0_44 = arith.constant 0 : index
    %127 = vector.load %arg9[%c0_43, %c0_44] : memref<1x64xf32, #tpu.memory_space<vmem>>, vector<1x64xf32>
    %128 = vector.broadcast %127 : vector<1x64xf32> to vector<15x64xf32>
    %129 = arith.addf %126, %128 : vector<15x64xf32>
    %130 = arith.mulf %129, %129 : vector<15x64xf32>
    %131 = arith.mulf %129, %130 : vector<15x64xf32>
    %cst_45 = arith.constant 4.471500e-02 : f32
    %132 = vector.broadcast %cst_45 : f32 to vector<15x64xf32>
    %133 = arith.mulf %132, %131 : vector<15x64xf32>
    %134 = arith.addf %129, %133 : vector<15x64xf32>
    %cst_46 = arith.constant 0.797884583 : f32
    %135 = vector.broadcast %cst_46 : f32 to vector<15x64xf32>
    %136 = arith.mulf %135, %134 : vector<15x64xf32>
    %137 = math.tanh %136 : vector<15x64xf32>
    %cst_47 = arith.constant 1.000000e+00 : f32
    %138 = vector.broadcast %cst_47 : f32 to vector<15x64xf32>
    %139 = arith.addf %138, %137 : vector<15x64xf32>
    %cst_48 = arith.constant 5.000000e-01 : f32
    %140 = vector.broadcast %cst_48 : f32 to vector<15x64xf32>
    %141 = arith.mulf %140, %139 : vector<15x64xf32>
    %142 = arith.mulf %129, %141 : vector<15x64xf32>
    %143 = arith.truncf %142 : vector<15x64xf32> to vector<15x64xbf16>
    %c0_49 = arith.constant 0 : index
    %c0_50 = arith.constant 0 : index
    %144 = vector.load %arg10[%c0_49, %c0_50] : memref<64x32xbf16, #tpu.memory_space<vmem>>, vector<64x32xbf16>
    %cst_51 = arith.constant dense<0.000000e+00> : vector<15x32xf32>
    %145 = tpu.matmul %143, %144, %cst_51 {dimension_numbers = #tpu.dot_dimension_numbers<[1], [0], [0], [1], [0, 0, 1, 1], [], []>} : vector<15x64xbf16>, vector<64x32xbf16>, vector<15x32xf32> -> vector<15x32xf32>
    %c0_52 = arith.constant 0 : index
    %c0_53 = arith.constant 0 : index
    %146 = vector.load %arg11[%c0_52, %c0_53] : memref<1x32xf32, #tpu.memory_space<vmem>>, vector<1x32xf32>
    %147 = vector.broadcast %146 : vector<1x32xf32> to vector<15x32xf32>
    %148 = arith.addf %145, %147 : vector<15x32xf32>
    %149 = arith.addf %123, %148 : vector<15x32xf32>
    %c0_54 = arith.constant 0 : index
    %c0_55 = arith.constant 0 : index
    %150 = vector.load %arg12[%c0_54, %c0_55] : memref<1x32xf32, #tpu.memory_space<vmem>>, vector<1x32xf32>
    %c0_56 = arith.constant 0 : index
    %c0_57 = arith.constant 0 : index
    %151 = vector.load %arg13[%c0_56, %c0_57] : memref<1x32xf32, #tpu.memory_space<vmem>>, vector<1x32xf32>
    %cst_58 = arith.constant dense<0.000000e+00> : vector<15xf32>
    %152 = vector.multi_reduction <add>, %149, %cst_58 [1] : vector<15x32xf32> to vector<15xf32>
    %153 = vector.shape_cast %152 : vector<15xf32> to vector<15x1xf32>
    %cst_59 = arith.constant 3.200000e+01 : f32
    %154 = vector.broadcast %cst_59 : f32 to vector<15x1xf32>
    %155 = arith.divf %153, %154 : vector<15x1xf32>
    %156 = vector.broadcast %155 : vector<15x1xf32> to vector<15x32xf32>
    %157 = arith.subf %149, %156 : vector<15x32xf32>
    %158 = arith.mulf %157, %157 : vector<15x32xf32>
    %cst_60 = arith.constant dense<0.000000e+00> : vector<15xf32>
    %159 = vector.multi_reduction <add>, %158, %cst_60 [1] : vector<15x32xf32> to vector<15xf32>
    %160 = vector.shape_cast %159 : vector<15xf32> to vector<15x1xf32>
    %cst_61 = arith.constant 3.200000e+01 : f32
    %161 = vector.broadcast %cst_61 : f32 to vector<15x1xf32>
    %162 = arith.divf %160, %161 : vector<15x1xf32>
    %163 = vector.broadcast %155 : vector<15x1xf32> to vector<15x32xf32>
    %164 = arith.subf %149, %163 : vector<15x32xf32>
    %cst_62 = arith.constant 9.99999974E-6 : f32
    %165 = vector.broadcast %cst_62 : f32 to vector<15x1xf32>
    %166 = arith.addf %162, %165 : vector<15x1xf32>
    %167 = math.rsqrt %166 : vector<15x1xf32>
    %168 = vector.broadcast %167 : vector<15x1xf32> to vector<15x32xf32>
    %169 = arith.mulf %164, %168 : vector<15x32xf32>
    %170 = vector.broadcast %150 : vector<1x32xf32> to vector<15x32xf32>
    %171 = arith.mulf %169, %170 : vector<15x32xf32>
    %172 = vector.broadcast %151 : vector<1x32xf32> to vector<15x32xf32>
    %173 = arith.addf %171, %172 : vector<15x32xf32>
    %174 = arith.truncf %173 : vector<15x32xf32> to vector<15x32xbf16>
    %c0_63 = arith.constant 0 : index
    %c0_64 = arith.constant 0 : index
    %c0_65 = arith.constant 0 : index
    %175 = vector.load %arg14[%c0_63, %c0_64, %c0_65] : memref<1x15x32xbf16, #tpu.memory_space<vmem>>, vector<1x15x32xbf16>
    %176 = vector.shape_cast %175 : vector<1x15x32xbf16> to vector<15x32xbf16>
    %177 = vector.shape_cast %174 : vector<15x32xbf16> to vector<1x15x32xbf16>
    tpu.vector_store %arg14[%c0_63, %c0_64, %c0_65], %177 {strides = array<i32>} : memref<1x15x32xbf16, #tpu.memory_space<vmem>>, vector<1x15x32xbf16>,
    return
  }
  func.func @transform_0(%arg0: i32) -> (i32, i32, i32) {
    %c0_i32 = arith.constant 0 : i32
    %c0_i32_0 = arith.constant 0 : i32
    %c0_i32_1 = arith.constant 0 : i32
    return %arg0, %c0_i32, %c0_i32_0 : i32, i32, i32
  }
  func.func @transform_1(%arg0: i32) -> (i32, i32) {
    %c0_i32 = arith.constant 0 : i32
    %c0_i32_0 = arith.constant 0 : i32
    %c0_i32_1 = arith.constant 0 : i32
    return %c0_i32, %c0_i32_0 : i32, i32
  }
  func.func @transform_2(%arg0: i32) -> (i32, i32) {
    %c0_i32 = arith.constant 0 : i32
    %c0_i32_0 = arith.constant 0 : i32
    %c0_i32_1 = arith.constant 0 : i32
    return %c0_i32, %c0_i32_0 : i32, i32
  }
  func.func @transform_3(%arg0: i32) -> (i32, i32) {
    %c0_i32 = arith.constant 0 : i32
    %c0_i32_0 = arith.constant 0 : i32
    %c0_i32_1 = arith.constant 0 : i32
    return %c0_i32, %c0_i32_0 : i32, i32
  }
  func.func @transform_4(%arg0: i32) -> (i32, i32) {
    %c0_i32 = arith.constant 0 : i32
    %c0_i32_0 = arith.constant 0 : i32
    %c0_i32_1 = arith.constant 0 : i32
    return %c0_i32, %c0_i32_0 : i32, i32
  }
  func.func @transform_5(%arg0: i32) -> (i32, i32) {
    %c0_i32 = arith.constant 0 : i32
    %c0_i32_0 = arith.constant 0 : i32
    %c0_i32_1 = arith.constant 0 : i32
    return %c0_i32, %c0_i32_0 : i32, i32
  }
  func.func @transform_6(%arg0: i32) -> (i32, i32) {
    %c0_i32 = arith.constant 0 : i32
    %c0_i32_0 = arith.constant 0 : i32
    %c0_i32_1 = arith.constant 0 : i32
    return %c0_i32, %c0_i32_0 : i32, i32
  }
  func.func @transform_7(%arg0: i32) -> (i32, i32) {
    %c0_i32 = arith.constant 0 : i32
    %c0_i32_0 = arith.constant 0 : i32
    %c0_i32_1 = arith.constant 0 : i32
    return %c0_i32, %c0_i32_0 : i32, i32
  }
  func.func @transform_8(%arg0: i32) -> (i32, i32) {
    %c0_i32 = arith.constant 0 : i32
    %c0_i32_0 = arith.constant 0 : i32
    %c0_i32_1 = arith.constant 0 : i32
    return %c0_i32, %c0_i32_0 : i32, i32
  }
  func.func @transform_9(%arg0: i32) -> (i32, i32) {
    %c0_i32 = arith.constant 0 : i32
    %c0_i32_0 = arith.constant 0 : i32
    %c0_i32_1 = arith.constant 0 : i32
    return %c0_i32, %c0_i32_0 : i32, i32
  }
  func.func @transform_10(%arg0: i32) -> (i32, i32) {
    %c0_i32 = arith.constant 0 : i32
    %c0_i32_0 = arith.constant 0 : i32
    %c0_i32_1 = arith.constant 0 : i32
    return %c0_i32, %c0_i32_0 : i32, i32
  }
  func.func @transform_11(%arg0: i32) -> (i32, i32) {
    %c0_i32 = arith.constant 0 : i32
    %c0_i32_0 = arith.constant 0 : i32
    %c0_i32_1 = arith.constant 0 : i32
    return %c0_i32, %c0_i32_0 : i32, i32
  }
  func.func @transform_12(%arg0: i32) -> (i32, i32) {
    %c0_i32 = arith.constant 0 : i32
    %c0_i32_0 = arith.constant 0 : i32
    %c0_i32_1 = arith.constant 0 : i32
    return %c0_i32, %c0_i32_0 : i32, i32
  }
  func.func @transform_13(%arg0: i32) -> (i32, i32, i32) {
    %c0_i32 = arith.constant 0 : i32
    %c0_i32_0 = arith.constant 0 : i32
    %c0_i32_1 = arith.constant 0 : i32
    return %arg0, %c0_i32, %c0_i32_0 : i32, i32, i32
  }
}

module attributes {stable_mosaic.version = 11 : i64} {
  func.func @_final_kernel(%arg0: i32, %arg1: memref<1x7x2x32xbf16, #tpu.memory_space<vmem>>, %arg2: memref<32x128xbf16, #tpu.memory_space<vmem>>, %arg3: memref<1x128xf32, #tpu.memory_space<vmem>>, %arg4: memref<1x7x128xf32, #tpu.memory_space<vmem>>) attributes {dimension_semantics = [#tpu.dimension_semantics<parallel>], iteration_bounds = array<i64: 2>, scalar_prefetch = 0 : i64, scratch_operands = 0 : i64, tpu.core_type = #tpu.core_type<tc>, window_params = [{transform_indices = @transform_0, window_bounds = array<i64: 1, 7, 2, 32>}, {pipeline_mode = #tpu.pipeline_mode<synchronous>, transform_indices = @transform_1, window_bounds = array<i64: 32, 128>}, {pipeline_mode = #tpu.pipeline_mode<synchronous>, transform_indices = @transform_2, window_bounds = array<i64: 1, 128>}, {transform_indices = @transform_3, window_bounds = array<i64: 1, 7, 128>}]} {
    %c0 = arith.constant 0 : index
    %c0_0 = arith.constant 0 : index
    %c0_1 = arith.constant 0 : index
    %c0_2 = arith.constant 0 : index
    %0 = vector.load %arg1[%c0, %c0_0, %c0_1, %c0_2] : memref<1x7x2x32xbf16, #tpu.memory_space<vmem>>, vector<1x7x2x32xbf16>
    %1 = vector.shape_cast %0 : vector<1x7x2x32xbf16> to vector<7x2x32xbf16>
    %2 = vector.extract_strided_slice %1 {offsets = [0, 0, 0], sizes = [7, 1, 32], strides = [1, 1, 1]} : vector<7x2x32xbf16> to vector<7x1x32xbf16>
    %3 = vector.shape_cast %2 : vector<7x1x32xbf16> to vector<7x32xbf16>
    %4 = vector.extract_strided_slice %1 {offsets = [0, 1, 0], sizes = [7, 1, 32], strides = [1, 1, 1]} : vector<7x2x32xbf16> to vector<7x1x32xbf16>
    %5 = vector.shape_cast %4 : vector<7x1x32xbf16> to vector<7x32xbf16>
    %6 = arith.maximumf %3, %5 : vector<7x32xbf16>
    %c0_3 = arith.constant 0 : index
    %c0_4 = arith.constant 0 : index
    %7 = vector.load %arg2[%c0_3, %c0_4] : memref<32x128xbf16, #tpu.memory_space<vmem>>, vector<32x128xbf16>
    %cst = arith.constant dense<0.000000e+00> : vector<7x128xf32>
    %8 = tpu.matmul %6, %7, %cst {dimension_numbers = #tpu.dot_dimension_numbers<[1], [0], [0], [1], [0, 0, 1, 1], [], []>} : vector<7x32xbf16>, vector<32x128xbf16>, vector<7x128xf32> -> vector<7x128xf32>
    %c0_5 = arith.constant 0 : index
    %c0_6 = arith.constant 0 : index
    %9 = vector.load %arg3[%c0_5, %c0_6] : memref<1x128xf32, #tpu.memory_space<vmem>>, vector<1x128xf32>
    %10 = vector.broadcast %9 : vector<1x128xf32> to vector<7x128xf32>
    %11 = arith.addf %8, %10 : vector<7x128xf32>
    %cst_7 = arith.constant dense<0xFF800000> : vector<7xf32>
    %12 = vector.multi_reduction <maximumf>, %11, %cst_7 [1] : vector<7x128xf32> to vector<7xf32>
    %13 = vector.shape_cast %12 : vector<7xf32> to vector<7x1xf32>
    %14 = vector.broadcast %13 : vector<7x1xf32> to vector<7x128xf32>
    %15 = arith.subf %11, %14 : vector<7x128xf32>
    %16 = math.exp %15 : vector<7x128xf32>
    %cst_8 = arith.constant dense<0.000000e+00> : vector<7xf32>
    %17 = vector.multi_reduction <add>, %16, %cst_8 [1] : vector<7x128xf32> to vector<7xf32>
    %18 = vector.shape_cast %17 : vector<7xf32> to vector<7x1xf32>
    %19 = math.log %18 : vector<7x1xf32>
    %20 = arith.addf %19, %13 : vector<7x1xf32>
    %21 = vector.broadcast %20 : vector<7x1xf32> to vector<7x128xf32>
    %22 = arith.subf %11, %21 : vector<7x128xf32>
    %c0_9 = arith.constant 0 : index
    %c0_10 = arith.constant 0 : index
    %c0_11 = arith.constant 0 : index
    %23 = vector.load %arg4[%c0_9, %c0_10, %c0_11] : memref<1x7x128xf32, #tpu.memory_space<vmem>>, vector<1x7x128xf32>
    %24 = vector.shape_cast %23 : vector<1x7x128xf32> to vector<7x128xf32>
    %25 = vector.shape_cast %22 : vector<7x128xf32> to vector<1x7x128xf32>
    tpu.vector_store %arg4[%c0_9, %c0_10, %c0_11], %25 {strides = array<i32>} : memref<1x7x128xf32, #tpu.memory_space<vmem>>, vector<1x7x128xf32>,
    return
  }
  func.func @transform_0(%arg0: i32) -> (i32, i32, i32, i32) {
    %c0_i32 = arith.constant 0 : i32
    %c0_i32_0 = arith.constant 0 : i32
    %c0_i32_1 = arith.constant 0 : i32
    %c0_i32_2 = arith.constant 0 : i32
    return %arg0, %c0_i32, %c0_i32_0, %c0_i32_1 : i32, i32, i32, i32
  }
  func.func @transform_1(%arg0: i32) -> (i32, i32) {
    %c0_i32 = arith.constant 0 : i32
    %c0_i32_0 = arith.constant 0 : i32
    %c0_i32_1 = arith.constant 0 : i32
    return %c0_i32, %c0_i32_0 : i32, i32
  }
  func.func @transform_2(%arg0: i32) -> (i32, i32) {
    %c0_i32 = arith.constant 0 : i32
    %c0_i32_0 = arith.constant 0 : i32
    %c0_i32_1 = arith.constant 0 : i32
    return %c0_i32, %c0_i32_0 : i32, i32
  }
  func.func @transform_3(%arg0: i32) -> (i32, i32, i32) {
    %c0_i32 = arith.constant 0 : i32
    %c0_i32_0 = arith.constant 0 : i32
    %c0_i32_1 = arith.constant 0 : i32
    return %arg0, %c0_i32, %c0_i32_0 : i32, i32, i32
  }
}

</mosaic_0001>

<bundles_post_ra>
// kernel: model_forward.6
= control target key start
LH: loop header
LB: loop body
LE: loop exit
PB: predicated region body
PF: predicated region fallthrough
CT: control target
= control target key end

     0   :  { %s548_s15 = smov 0   ;;  %s589_s0 = inlined_call_operand.vmem [shape: bf16[2,31,4], index: 0, kind: input, shape index: {}]   ;;  %s590_s1 = inlined_call_operand.vmem [shape: bf16[4,16], index: 1, kind: input, shape index: {}]   ;;  %s591_s2 = inlined_call_operand.vmem [shape: f32[1,16], index: 2, kind: input, shape index: {}]   ;;  %s592_s3 = inlined_call_operand.vmem [shape: f32[1,16], index: 3, kind: input, shape index: {}]   ;;  %s593_s4 = inlined_call_operand.vmem [shape: bf16[2,31,16], index: 4, kind: output, shape index: {}]  }
   0x1 LB: > { %s458_s16 = sadd.s32 4294967295, %s521_s15   ;;  %p462_p0 = scmp.ge.s32.totalorder %s521_s15, 1  ;;  %s521_s15 = sphi %s548_s15, %s14_s15  }
   0x2   : > { %p162_p1 = scmp.lt.s32.totalorder %s521_s15, 3 }
   0x4   : > { %p163_p2 = pnand %p462_p0, %p162_p1 }
   0x5   : > { %v203_v0 = vld [vmem:[%s590_s1] sm:$0x3] (!%p163_p2)  ;;  %vm221_vm0 = vcmask (!%p163_p2), 1041408   ;;  %p188_p3 = scmp.lt.s32.totalorder (!%p163_p2), %s458_s16, 1  ;;  %vm214_vm1 = vcmask (!%p163_p2), 31744   ;;  %vm274_vm2 = vcmask (!%p163_p2), 130048  }
   0x6   : > { %166 = sbr.rel (%p163_p2) target bundleno = 332 (0x14c), region = 36  ;;  %494 = vmatprep.subr.msk.bf16.mxu0 (!%p163_p2), %vm221_vm0, %v203_v0  ;;  %v223_v1 = vsel (!%p163_p2), %vm221_vm0, %v203_v0, 0  ;;  %vm280_vm3 = vcmask (!%p163_p2), 129024   ;;  %v471_v46 = vld [vmem:[%s591_s2] ss:$0 sm:$0xff] (!%p163_p2)  ;;  %vm393_vm4 = vcmask (!%p163_p2), 125952  }
   0x7   : > { %489 = vmatpush3.bf16.msra.mxu0 (!%p163_p2), %v223_v1  ;;  %v472_v51 = vld [vmem:[%s592_s3] ss:$0 sm:$0xff] (!%p163_p2)  ;;  %vm398_vm5 = vsmask.f32 (!%p163_p2), 3328 }
   0x8   : > { %vm399_vm6 = vmand (!%p163_p2), %vm393_vm4, %vm398_vm5 }
   0xd   : > { %s595_s16 = smov (!%p188_p3, %s458_s16), 1 }
   0xe   : > { %s479_s19 = sshll.u32 %s595_s16, 4 }
   0xf   : > { %s192_s22 = scalar_lea.vmem %s589_s0, %s479_s19  ;;  %s197_s29 = scalar_lea.vmem %s593_s4, %s479_s19 }
  0x10   : > { %v503_v2 = vld [vmem:[%s192_s22] sm:$0xff]   ;;  %v504_v3 = vld [vmem:[%s192_s22 + $0x8] sm:$0xff]  }
  0x11   : > { %490 = vmatprep.mubr.msk.bf16.mxu0 %vm214_vm1, %v503_v2 }
  0x12   : > { %491 = vmatmul.mubr.msk.bf16.vlgmr.msra.gmra.mrb[0].mxu0 %vm214_vm1, %v504_v3 }
  0xe5   : > { %v492_v4 = vpop.f32.mrb[0].mxu0 }
  0xe6   : > { %v259_v5 = vpop.f32.mrb[1].mxu0  ;;  %v278_v11 = vsel %vm274_vm2, %v492_v4, 0.0 }
  0xe7   : > { %v493_v6 = vpop.f32.mrb[2].mxu0  ;;  %v275_v8 = vsel %vm274_vm2, %v259_v5, 0.0 }
  0xe8   : > { %v262_v7 = vpop.f32.mrb[3].mxu0  ;;  %v281_v13 = vsel %vm280_vm3, %v493_v6, 0.0 }
  0xe9   : > { %v276_v9 = vsel %vm274_vm2, %v262_v7, 0.0 }
  0xea   : > { %v277_v10 = vadd.f32 %v276_v9, %v275_v8 }
  0xec   : > { %v279_v12 = vadd.f32 %v278_v11, %v277_v10 }
  0xee   : > { %v282_v14 = vadd.f32 %v281_v13, %v279_v12 }
  0xf0   : > { %v283_v15 = vrot.slane %v282_v14, 4 }
  0xf2   : > { %v284_v16 = vadd.f32 %v283_v15, %v282_v14 }
  0xf4   : > { %v285_v17 = vrot.slane %v284_v16, 2 }
  0xf6   : > { %v286_v18 = vadd.f32 %v285_v17, %v284_v16 }
  0xf8   : > { %v287_v19 = vrot.slane %v286_v18, 1 }
  0xfa   : > { %v288_v20 = vadd.f32 %v287_v19, %v286_v18 }
  0xfc   : > { %v290_v21 = vmul.f32 0.032258064, %v288_v20 }
  0xfe   : > { %v291_v22 = vsub.f32 %v259_v5, %v290_v21  ;;  %v292_v23 = vsub.f32 %v262_v7, %v290_v21  ;;  %v293_v24 = vsub.f32 %v492_v4, %v290_v21  ;;  %v294_v25 = vsub.f32 %v493_v6, %v290_v21 }
 0x100   : > { %v295_v26 = vmul.f32 %v291_v22, %v291_v22  ;;  %v296_v27 = vmul.f32 %v292_v23, %v292_v23  ;;  %v297_v28 = vmul.f32 %v293_v24, %v293_v24  ;;  %v298_v29 = vmul.f32 %v294_v25, %v294_v25 }
 0x102   : > { %v299_v30 = vsel %vm274_vm2, %v295_v26, 0.0  ;;  %v300_v31 = vsel %vm274_vm2, %v296_v27, 0.0  ;;  %v302_v33 = vsel %vm274_vm2, %v297_v28, 0.0  ;;  %v304_v35 = vsel %vm280_vm3, %v298_v29, 0.0 }
 0x103   : > { %v301_v32 = vadd.f32 %v300_v31, %v299_v30 }
 0x105   : > { %v303_v34 = vadd.f32 %v302_v33, %v301_v32 }
 0x107   : > { %v305_v36 = vadd.f32 %v304_v35, %v303_v34  ;;  %v400_v34 = vld [vmem:[%s197_s29 + $0xc] sm:$0xf] }
 0x109   : > { %v306_v37 = vrot.slane %v305_v36, 4 }
 0x10b   : > { %v307_v38 = vadd.f32 %v306_v37, %v305_v36 }
 0x10d   : > { %v308_v39 = vrot.slane %v307_v38, 2 }
 0x10f   : > { %v309_v40 = vadd.f32 %v308_v39, %v307_v38 }
 0x111   : > { %v310_v41 = vrot.slane %v309_v40, 1 }
 0x113   : > { %v311_v42 = vadd.f32 %v310_v41, %v309_v40 }
 0x115   : > { %v312_v43 = vmul.f32 0.032258064, %v311_v42 }
 0x117   : > { %v313_v44 = vadd.f32 1e-05, %v312_v43 }
 0x119   : > { %505 = vrsqrt.f32 %v313_v44 }
 0x123   : > { %v506_v45 = vpop.eup %505 }
 0x124   : > { %v315_v47 = vmul.f32 %v506_v45, %v291_v22  ;;  %v316_v48 = vmul.f32 %v506_v45, %v292_v23  ;;  %v317_v49 = vmul.f32 %v506_v45, %v293_v24  ;;  %v318_v50 = vmul.f32 %v506_v45, %v294_v25 }
 0x126   : > { %v326_v52 = vmul.f32 %v471_v46, %v315_v47  ;;  %v327_v53 = vmul.f32 %v471_v46, %v316_v48  ;;  %v328_v54 = vmul.f32 %v471_v46, %v317_v49  ;;  %v329_v55 = vmul.f32 %v471_v46, %v318_v50 }
 0x128   : > { %v337_v56 = vadd.f32 %v472_v51, %v326_v52  ;;  %v338_v57 = vadd.f32 %v472_v51, %v327_v53  ;;  %v339_v58 = vadd.f32 %v472_v51, %v328_v54  ;;  %v340_v59 = vadd.f32 %v472_v51, %v329_v55 }
 0x12a   : > { %v341_v60 = vmul.f32 %v337_v56, %v337_v56  ;;  %v342_v61 = vmul.f32 %v338_v57, %v338_v57  ;;  %v343_v62 = vmul.f32 %v339_v58, %v339_v58  ;;  %v344_v63 = vmul.f32 %v340_v59, %v340_v59 }
 0x12c   : > { %v345_v0 = vmul.f32 %v341_v60, %v337_v56  ;;  %v346_v1 = vmul.f32 %v342_v61, %v338_v57  ;;  %v347_v2 = vmul.f32 %v343_v62, %v339_v58  ;;  %v348_v3 = vmul.f32 %v344_v63, %v340_v59 }
 0x12e   : > { %v349_v4 = vmul.f32 0.044715, %v345_v0  ;;  %v350_v5 = vmul.f32 0.044715, %v346_v1  ;;  %v351_v6 = vmul.f32 0.044715, %v347_v2 }
 0x12f   : > { %v352_v7 = vmul.f32 0.044715, %v348_v3 }
 0x130   : > { %v353_v8 = vadd.f32 %v349_v4, %v337_v56  ;;  %v354_v9 = vadd.f32 %v350_v5, %v338_v57  ;;  %v355_v10 = vadd.f32 %v351_v6, %v339_v58 }
 0x131   : > { %v356_v11 = vadd.f32 %v352_v7, %v340_v59 }
 0x132   : > { %v357_v12 = vmul.f32 0.7978846, %v353_v8  ;;  %v358_v13 = vmul.f32 0.7978846, %v354_v9  ;;  %v359_v14 = vmul.f32 0.7978846, %v355_v10 }
 0x133   : > { %v360_v15 = vmul.f32 0.7978846, %v356_v11 }
 0x134   : > { %507 = vtanh.f32 %v357_v12 }
 0x135   : > { %509 = vtanh.f32 %v358_v13 }
 0x136   : > { %511 = vtanh.f32 %v359_v14 }
 0x137   : > { %513 = vtanh.f32 %v360_v15 }
 0x13e   : > { %v508_v16 = vpop.eup %507 }
 0x13f   : > { %v510_v17 = vpop.eup %509  ;;  %v365_v18 = vadd.f32 1.0, %v508_v16 }
 0x140   : > { %v512_v19 = vpop.eup %511  ;;  %v366_v20 = vadd.f32 1.0, %v510_v17 }
 0x141   : > { %v514_v21 = vpop.eup %513  ;;  %v367_v22 = vadd.f32 1.0, %v512_v19  ;;  %v369_v23 = vmul.f32 0.5, %v365_v18 }
 0x142   : > { %v368_v24 = vadd.f32 1.0, %v514_v21  ;;  %v370_v25 = vmul.f32 0.5, %v366_v20 }
 0x143   : > { %v371_v26 = vmul.f32 0.5, %v367_v22  ;;  %v373_v27 = vmul.f32 %v369_v23, %v337_v56 }
 0x144   : > { %v372_v28 = vmul.f32 0.5, %v368_v24  ;;  %v374_v29 = vmul.f32 %v370_v25, %v338_v57 }
 0x145   : > { %v375_v30 = vmul.f32 %v371_v26, %v339_v58  ;;  %v481_v31 = vpack.c.bf16 %v373_v27, %v373_v27 }
 0x146   : > { %v376_v32 = vmul.f32 %v372_v28, %v340_v59  ;;  %v482_v33 = vpack.c.bf16 %v374_v29, %v374_v29 }
 0x147   : > { %v483_v35 = vpack.c.bf16 %v375_v30, %v375_v30  ;;  %394 = vst.msk [vmem:[%s197_s29] sm:$0xf] %vm393_vm4, %v481_v31 }
 0x148   : > { %v484_v36 = vpack.c.bf16 %v376_v32, %v376_v32  ;;  %395 = vst.msk [vmem:[%s197_s29 + $0x4] sm:$0xf] %vm393_vm4, %v482_v33 }
 0x149   : > { %396 = vst.msk [vmem:[%s197_s29 + $0x8] sm:$0xf] %vm393_vm4, %v483_v35 }
 0x14a   : > { %v401_v37 = vsel %vm399_vm6, %v484_v36, %v400_v34 }
 0x14b   : > { %402 = vst [vmem:[%s197_s29 + $0xc] sm:$0xf] %v401_v37 }
 0x14c PF: > { %s14_s15 = sadd.s32 1, %s521_s15  }
 0x14d   : > { %p11_p4 = scmp.ge.s32.totalorder %s14_s15, 4  }
 0x14f   :  { %13 = sbr.rel (!%p11_p4) target bundleno = 1 (0x1), region = 66 }

// kernel: model_forward.7
= control target key start
LH: loop header
LB: loop body
LE: loop exit
PB: predicated region body
PF: predicated region fallthrough
CT: control target
= control target key end

     0   :  { %s629_s21 = smov 0   ;;  %s674_s0 = inlined_call_operand.vmem [shape: bf16[2,15,32], index: 0, kind: input, shape index: {}]   ;;  %s675_s1 = inlined_call_operand.vmem [shape: bf16[32,16], index: 1, kind: input, shape index: {}]   ;;  %s676_s2 = inlined_call_operand.vmem [shape: f32[1,16], index: 2, kind: input, shape index: {}]   ;;  %s677_s3 = inlined_call_operand.vmem [shape: f32[1,16], index: 3, kind: input, shape index: {}]   ;;  %s678_s4 = inlined_call_operand.vmem [shape: bf16[16,32], index: 4, kind: input, shape index: {}]   ;;  %s679_s5 = inlined_call_operand.vmem [shape: f32[1,32], index: 5, kind: input, shape index: {}]   ;;  %s680_s6 = inlined_call_operand.vmem [shape: bf16[2,15,32], index: 6, kind: output, shape index: {}]  }
   0x1 LB: > { %s517_s22 = sadd.s32 4294967295, %s590_s21   ;;  %p521_p0 = scmp.ge.s32.totalorder %s590_s21, 1  ;;  %s590_s21 = sphi %s629_s21, %s16_s21  }
   0x2   : > { %p212_p1 = scmp.lt.s32.totalorder %s590_s21, 3 }
   0x4   : > { %p213_p2 = pnand %p521_p0, %p212_p1 }
   0x5   : > { %v572_v0 = vld [vmem:[%s675_s1] sm:$0xff] (!%p213_p2)   ;;  %v592_v1 = vmov (!%p213_p2), 0.0   ;;  %v573_v2 = vld [vmem:[%s675_s1 + $0x8] sm:$0xff] (!%p213_p2)   ;;  %vm593_vm0 = vmmov (!%p213_p2), 0   ;;  %p242_p3 = scmp.lt.s32.totalorder (!%p213_p2), %s517_s22, 1  ;;  %vm276_vm1 = vcmask (!%p213_p2), 261120  }
   0x6   : > { %216 = sbr.rel (%p213_p2) target bundleno = 795 (0x31b), region = 44  ;;  %548 = vmatprep.subr.bf16.mxu0 (!%p213_p2), %v592_v1  ;;  %556 = vmatprep.subr.bf16.mxu1 (!%p213_p2), %v592_v1  ;;  %vm341_vm2 = vcmask (!%p213_p2), 130048   ;;  %vm345_vm3 = vcmask (!%p213_p2), 129024   ;;  %v575_v38 = vld [vmem:[%s678_s4] sm:$0xff] (!%p213_p2)   ;;  %vm454_vm4 = vcmask (!%p213_p2), 257024  }
   0x7   : > { %549 = vmatpush3.bf16.msra.mxu0 (!%p213_p2), %v572_v0  ;;  %552 = vmatprep.mubr.msk.bf16.mxu0 (!%p213_p2), %vm593_vm0, %v592_v1  ;;  %v530_v47 = vld [vmem:[%s676_s2] ss:$0 sm:$0xff] (!%p213_p2)  ;;  %vm457_vm5 = vsmask.f32 (!%p213_p2), 3328 }
   0x8   : > { %550 = vmatprep.subr.bf16.mxu0 (!%p213_p2), %v592_v1  ;;  %558 = vmatprep.mubr.msk.bf16.mxu1 (!%p213_p2), %vm593_vm0, %v592_v1  ;;  %v531_v51 = vld [vmem:[%s677_s3] ss:$0 sm:$0xff] (!%p213_p2)  ;;  %vm458_vm6 = vmand (!%p213_p2), %vm454_vm4, %vm457_vm5 }
   0x9   : > { %557 = vmatpush3.bf16.msra.mxu1 (!%p213_p2), %v575_v38  ;;  %v532_v56 = vld [vmem:[%s679_s5] ss:$0 sm:$0xff] (!%p213_p2) }
   0xb   : > { %551 = vmatpush3.bf16.msra.mxu0 (!%p213_p2), %v573_v2 }
   0xd   : > { %s682_s22 = smov (!%p242_p3, %s517_s22), 1 }
   0xe   : > { %s539_s27 = sshll.u32 %s682_s22, 3 }
   0xf   : > { %s246_s30 = scalar_lea.vmem %s674_s0, %s539_s27  ;;  %s251_s17 = scalar_lea.vmem %s680_s6, %s539_s27 }
  0x10   : > { %v574_v3 = vld [vmem:[%s246_s30] sm:$0xff]  }
  0x11   : > { %553 = vmatmul.mubr.msk.bf16.vlgmr.msra.gmra.mrb[0].mxu0 %vm276_vm1, %v574_v3  ;;  %v459_v0 = vld [vmem:[%s251_s17 + $0x4] sm:$0xf] }
  0xe4   : > { %v314_v4 = vpop.f32.mrb[0].mxu0 }
  0xe5   : > { %v321_v5 = vmul.f32 %v314_v4, %v314_v4  ;;  %v554_v6 = vpop.f32.mrb[1].mxu0 }
  0xe6   : > { %v317_v7 = vpop.f32.mrb[2].mxu0 }
  0xe7   : > { %v323_v8 = vmul.f32 %v321_v5, %v314_v4  ;;  %v322_v9 = vmul.f32 %v317_v7, %v317_v7  ;;  %v555_v10 = vpop.f32.mrb[3].mxu0 }
  0xe9   : > { %v325_v11 = vmul.f32 0.044715, %v323_v8  ;;  %v324_v12 = vmul.f32 %v322_v9, %v317_v7 }
  0xeb   : > { %v327_v13 = vadd.f32 %v325_v11, %v314_v4  ;;  %v326_v14 = vmul.f32 0.044715, %v324_v12 }
  0xed   : > { %v329_v15 = vmul.f32 0.7978846, %v327_v13  ;;  %v328_v16 = vadd.f32 %v326_v14, %v317_v7 }
  0xef   : > { %576 = vtanh.f32 %v329_v15  ;;  %v330_v17 = vmul.f32 0.7978846, %v328_v16 }
  0xf1   : > { %578 = vtanh.f32 %v330_v17 }
  0xf9   : > { %v577_v18 = vpop.eup %576 }
  0xfa   : > { %v333_v19 = vadd.f32 1.0, %v577_v18 }
  0xfb   : > { %v579_v20 = vpop.eup %578 }
  0xfc   : > { %v335_v21 = vmul.f32 0.5, %v333_v19  ;;  %v334_v22 = vadd.f32 1.0, %v579_v20 }
  0xfe   : > { %v337_v23 = vmul.f32 %v335_v21, %v314_v4  ;;  %v336_v24 = vmul.f32 0.5, %v334_v22 }
 0x100   : > { %v342_v25 = vsel %vm341_vm2, %v337_v23, 0.0  ;;  %v338_v26 = vmul.f32 %v336_v24, %v317_v7 }
 0x101   : > { %343 = vadd.xlane.f32.xlu0 %v342_v25 }
 0x102   : > { %v346_v27 = vsel %vm345_vm3, %v338_v26, 0.0 }
 0x105   : > { %347 = vadd.xlane.f32.xlu0 %v346_v27 }
 0x18e   : > { %v344_v28 = vpop.xlane.xlu0 %343 }
 0x18f   : > { %v350_v29 = vmul.f32 0.0625, %v344_v28 }
 0x191   : > { %v352_v30 = vsub.f32 %v337_v23, %v350_v29 }
 0x192   : > { %v348_v31 = vpop.xlane.xlu0 %347 }
 0x193   : > { %v351_v32 = vmul.f32 0.0625, %v348_v31  ;;  %v354_v33 = vmul.f32 %v352_v30, %v352_v30 }
 0x195   : > { %v353_v34 = vsub.f32 %v338_v26, %v351_v32  ;;  %v356_v35 = vsel %vm341_vm2, %v354_v33, 0.0 }
 0x196   : > { %357 = vadd.xlane.f32.xlu1 %v356_v35 }
 0x197   : > { %v355_v36 = vmul.f32 %v353_v34, %v353_v34 }
 0x199   : > { %v359_v37 = vsel %vm345_vm3, %v355_v36, 0.0 }
 0x19a   : > { %360 = vadd.xlane.f32.xlu1 %v359_v37 }
 0x223   : > { %v358_v39 = vpop.xlane.xlu1 %357 }
 0x224   : > { %v362_v40 = vmul.f32 0.0625, %v358_v39 }
 0x226   : > { %v364_v41 = vadd.f32 1e-05, %v362_v40 }
 0x227   : > { %v361_v42 = vpop.xlane.xlu1 %360 }
 0x228   : > { %580 = vrsqrt.f32 %v364_v41  ;;  %v363_v43 = vmul.f32 0.0625, %v361_v42 }
 0x22a   : > { %v365_v44 = vadd.f32 1e-05, %v363_v43 }
 0x22c   : > { %582 = vrsqrt.f32 %v365_v44 }
 0x232   : > { %v581_v45 = vpop.eup %580 }
 0x233   : > { %v368_v46 = vmul.f32 %v581_v45, %v352_v30 }
 0x235   : > { %v376_v50 = vmul.f32 %v530_v47, %v368_v46 }
 0x236   : > { %v583_v48 = vpop.eup %582 }
 0x237   : > { %v369_v49 = vmul.f32 %v583_v48, %v353_v34  ;;  %v384_v53 = vadd.f32 %v531_v51, %v376_v50 }
 0x239   : > { %v377_v52 = vmul.f32 %v530_v47, %v369_v49 }
 0x23b   : > { %v385_v54 = vadd.f32 %v531_v51, %v377_v52 }
 0x23d   : > { %v386_v55 = vpack.c.bf16 %v385_v54, %v384_v53 }
 0x23f   : > { %559 = vmatmul.mubr.msk.bf16.vlgmr.msra.gmra.mrb[0].mxu1 %vm341_vm2, %v386_v55 }
 0x312   : > { %v439_v57 = vpop.f32.mrb[0].mxu1 }
 0x313   : > { %v440_v58 = vadd.f32 %v532_v56, %v439_v57  ;;  %v560_v59 = vpop.f32.mrb[1].mxu1 }
 0x314   : > { %v442_v60 = vpop.f32.mrb[2].mxu1 }
 0x315   : > { %v541_v61 = vpack.c.bf16 %v440_v58, %v440_v58  ;;  %v443_v62 = vadd.f32 %v532_v56, %v442_v60  ;;  %v561_v63 = vpop.f32.mrb[3].mxu1 }
 0x317   : > { %455 = vst.msk [vmem:[%s251_s17] sm:$0xf] %vm454_vm4, %v541_v61  ;;  %v542_v1 = vpack.c.bf16 %v443_v62, %v443_v62 }
 0x319   : > { %v460_v2 = vsel %vm458_vm6, %v542_v1, %v459_v0 }
 0x31a   : > { %461 = vst [vmem:[%s251_s17 + $0x4] sm:$0xf] %v460_v2 }
 0x31b PF: > { %s16_s21 = sadd.s32 1, %s590_s21  }
 0x31c   : > { %p13_p4 = scmp.ge.s32.totalorder %s16_s21, 4  }
 0x31e   :  { %15 = sbr.rel (!%p13_p4) target bundleno = 1 (0x1), region = 74 }

// kernel: model_forward.8
= control target key start
LH: loop header
LB: loop body
LE: loop exit
PB: predicated region body
PF: predicated region fallthrough
CT: control target
= control target key end

     0   :  { %s1127_s18 = smov 0   ;;  %s1235_s0 = inlined_call_operand.vmem [shape: bf16[2,19,32], index: 0, kind: input, shape index: {}]   ;;  %s1236_s1 = inlined_call_operand.vmem [shape: bf16[2,4,16,16], index: 1, kind: input, shape index: {}]   ;;  %s1237_s2 = inlined_call_operand.vmem [shape: f32[1,32], index: 2, kind: input, shape index: {}]   ;;  %s1238_s3 = inlined_call_operand.vmem [shape: f32[1,32], index: 3, kind: input, shape index: {}]   ;;  %s1239_s4 = inlined_call_operand.vmem [shape: f32[1,32], index: 4, kind: input, shape index: {}]   ;;  %s1240_s5 = inlined_call_operand.vmem [shape: bf16[2,15,32], index: 5, kind: output, shape index: {}]  }
   0x1 LB: > { %s909_s19 = sadd.s32 4294967295, %s1091_s18   ;;  %p913_p0 = scmp.ge.s32.totalorder %s1091_s18, 1  ;;  %s1091_s18 = sphi %s1127_s18, %s15_s18  }
   0x2   : > { %p187_p1 = scmp.lt.s32.totalorder %s1091_s18, 3 }
   0x4   : > { %p188_p2 = pnand %p913_p0, %p187_p1 }
   0x5   : > { %p215_p3 = scmp.lt.s32.totalorder (!%p188_p2), %s909_s19, 1  ;;  %v1093_v0 = vmov (!%p188_p2), 0.0   ;;  %v1067_v1 = vld [vmem:[%s1236_s1 + $0x28] sm:$0xff] (!%p188_p2)   ;;  %vm1094_vm0 = vmmov (!%p188_p2), 0   ;;  %vm469_vm1 = vcmask (!%p188_p2), 1046528   ;;  %s1095_s26 = smov (!%p188_p2), 112  }
   0x6   : > { %191 = sbr.rel (%p188_p2) target bundleno = 864 (0x360), region = 40  ;;  %991 = vmatprep.subr.bf16.mxu1 (!%p188_p2), %v1093_v0  ;;  %979 = vmatprep.subr.bf16.mxu0 (!%p188_p2), %v1093_v0  ;;  %vm585_vm2 = vsmask.f32 (!%p188_p2), 6400  ;;  %v1071_v27 = vld [vmem:[%s1236_s1 + $0x8] sm:$0xff] (!%p188_p2)   ;;  %v1072_v28 = vld [vmem:[%s1236_s1] sm:$0xff] (!%p188_p2)   ;;  %vm259_vm3 = vcmask (!%p188_p2), 130048  }
   0x7   : > { %993 = vmatprep.mubr.msk.bf16.mxu1 (!%p188_p2), %vm1094_vm0, %v1093_v0  ;;  %981 = vmatprep.mubr.msk.bf16.mxu0 (!%p188_p2), %vm1094_vm0, %v1093_v0  ;;  %v1073_v29 = vld [vmem:[%s1236_s1 + $0x10] sm:$0xff] (!%p188_p2)   ;;  %v1074_v30 = vld [vmem:[%s1236_s1 + $0x18] sm:$0xff] (!%p188_p2)   ;;  %v1068_v31 = vld [vmem:[%s1236_s1 + $0x20] sm:$0xff] (!%p188_p2)   ;;  %s1096_s16 = smov (!%p188_p2), 16   ;;  %vm751_vm4 = vcmask (!%p188_p2), 1041408   ;;  %vm771_vm5 = vcmask (!%p188_p2), 253952  }
   0x8   : > { %992 = vmatpush3.bf16.msra.mxu1 (!%p188_p2), %v1067_v1  ;;  %980 = vmatpush3.bf16.msra.mxu0 (!%p188_p2), %v1071_v27  ;;  %v1069_v34 = vld [vmem:[%s1236_s1 + $0x30] sm:$0xff] (!%p188_p2)   ;;  %v1070_v36 = vld [vmem:[%s1236_s1 + $0x38] sm:$0xff] (!%p188_p2)   ;;  %v950_v46 = vld [vmem:[%s1237_s2] ss:$0 sm:$0xff] (!%p188_p2)  ;;  %vm767_vm6 = vcmask (!%p188_p2), 261120   ;;  %vm763_vm7 = vcmask (!%p188_p2), 261122  }
   0x9   : > { %997 = vmatprep.subr.bf16.mxu1 (!%p188_p2), %v1093_v0  ;;  %985 = vmatprep.subr.bf16.mxu0 (!%p188_p2), %v1093_v0  ;;  %vm834_vm8 = vcmask (!%p188_p2), 1042432   ;;  %vm835_vm9 = vcmask (!%p188_p2), 1046532   ;;  %vm846_vm10 = vcmask (!%p188_p2), 257024   ;;  %vm849_vm11 = vsmask.f32 (!%p188_p2), 3328 }
   0xa   : > { %vm836_vm12 = vmor (!%p188_p2), %vm834_vm8, %vm835_vm9 }
   0xb   : > { %vm850_vm13 = vmand (!%p188_p2), %vm846_vm10, %vm849_vm11 }
   0xd   : > { %s1242_s19 = smov (!%p215_p3, %s909_s19), 1 }
   0xe   : > { %s1051_s22 = smul.u32 12, %s1242_s19 }
  0x10   : > { %s219_s25 = scalar_lea.vmem %s1235_s0, %s1051_s22 }
  0x11   : > { %v1151_v2 = vld [vmem:[%s219_s25 + $0x4] sm:$0xf]  ;;  %v232_v3 = vld [vmem:[%s219_s25] sm:$0xf]  ;;  %v1156_v6 = vld [vmem:[%s219_s25 + $0x8] sm:$0x1] }
  0x12   : > { %v1153_v4 = vld [vmem:[%s219_s25] sm:$0xe]  ;;  %v921_v5 = vcombine.low %v232_v3, %v1151_v2  ;;  %v935_v8 = vcombine.low %v1156_v6, %v1156_v6  ;;  %s959_s25 = sshll.u32 %s1242_s19, 3 }
  0x13   : > { %v934_v7 = vcombine.low %v1153_v4, %v1151_v2  ;;  %s224_s28 = scalar_lea.vmem %s1240_s5, %s959_s25 }
  0x14   : > { %v247_v9 = vshrl.u32 %v921_v5, 16  ;;  %v249_v10 = vshll.u32 %v921_v5, 16  ;;  %v471_v13 = vrot.slane %v935_v8, 1  ;;  %v595_v15 = vshrl.u32 %v935_v8, 16 }
  0x15   : > { %v470_v11 = vrot.slane %v934_v7, 1  ;;  %v587_v12 = vshrl.u32 %v934_v7, 16  ;;  %v590_v14 = vshll.u32 %v934_v7, 16  ;;  %v598_v16 = vshll.u32 %v935_v8, 16 }
  0x16   : > { %v251_v17 = vrot.slane %v249_v10, 1  ;;  %v597_v21 = vrot.slane %v595_v15, 1 }
  0x17   : > { %v589_v18 = vrot.slane %v587_v12, 1  ;;  %v472_v19 = vsel %vm469_vm1, %v470_v11, %v471_v13  ;;  %v592_v20 = vrot.slane %v590_v14, 2  ;;  %v600_v22 = vrot.slane %v598_v16, 2 }
  0x18   : > { %v252_v23 = vor.u32 %v251_v17, %v247_v9  ;;  %528 = vrot.lane.b32.xlu1 %v472_v19, %s1095_s26  ;;  %v231_v9 = vunpack.c.l.bf16 %v1156_v6  ;;  %v230_v11 = vunpack.c.l.bf16 %v1151_v2  ;;  %v229_v14 = vunpack.c.l.bf16 %v1153_v4 }
  0x19   : > { %v593_v24 = vor.u32 %v592_v20, %v589_v18  ;;  %v601_v25 = vor.u32 %v600_v22, %v597_v21 }
  0x1a   : > { %356 = vrot.lane.b32.xlu0 %v252_v23, %s1095_s26  ;;  %982 = vmatmul.mubr.msk.bf16.vlgmr.msra.gmra.mrb[0].mxu0 %vm259_vm3, %v252_v23 }
  0x1b   : > { %v602_v26 = vsel %vm585_vm2, %v593_v24, %v601_v25  ;;  %986 = vmatpush3.bf16.msra.mxu0 %v1072_v28  ;;  %987 = vmatprep.mubr.msk.bf16.mxu0 %vm1094_vm0, %v1093_v0 }
  0x1c   : > { %658 = vrot.lane.b32.xlu1 %v602_v26, %s1095_s26  ;;  %1003 = vmatprep.subr.bf16.mxu0 %v1093_v0 }
  0x1e   : > { %408 = vrot.lane.b32.xlu0 %v921_v5, %s1095_s26 }
  0x26   : > { %988 = vmatmul.mubr.msk.bf16.vlgmr.msra.gmra.mrb[0].mxu0 %vm259_vm3, %v921_v5 }
  0x27   : > { %1004 = vmatpush3.bf16.msra.mxu0 %v1073_v29  ;;  %1005 = vmatprep.mubr.msk.bf16.mxu0 %vm1094_vm0, %v1093_v0 }
  0x28   : > { %1015 = vmatprep.subr.bf16.mxu0 %v1093_v0 }
  0x32   : > { %1006 = vmatmul.mubr.msk.bf16.vlgmr.msra.gmra.mrb[0].mxu0 %vm259_vm3, %v472_v19 }
  0x33   : > { %1016 = vmatpush3.bf16.msra.mxu0 %v1074_v30  ;;  %1017 = vmatprep.mubr.msk.bf16.mxu0 %vm1094_vm0, %v1093_v0 }
  0x3e   : > { %1018 = vmatmul.mubr.msk.bf16.vlgmr.msra.gmra.mrb[0].mxu0 %vm259_vm3, %v602_v26 }
  0x8a   : > { %v529_v35 = vpop.permute.xlu1 %528 }
  0x8c   : > { %v357_v32 = vpop.permute.xlu0 %356 }
  0x8d   : > { %994 = vmatmul.mubr.msk.bf16.vlgmr.msra.gmra.mrb[0].mxu1 %vm259_vm3, %v357_v32 }
  0x8e   : > { %998 = vmatpush3.bf16.msra.mxu1 %v1068_v31  ;;  %999 = vmatprep.mubr.msk.bf16.mxu1 %vm1094_vm0, %v1093_v0  ;;  %v659_v37 = vpop.permute.xlu1 %658 }
  0x8f   : > { %1009 = vmatprep.subr.bf16.mxu1 %v1093_v0 }
  0x90   : > { %v409_v33 = vpop.permute.xlu0 %408 }
  0x99   : > { %1000 = vmatmul.mubr.msk.bf16.vlgmr.msra.gmra.mrb[0].mxu1 %vm259_vm3, %v409_v33 }
  0x9a   : > { %1010 = vmatpush3.bf16.msra.mxu1 %v1069_v34  ;;  %1011 = vmatprep.mubr.msk.bf16.mxu1 %vm1094_vm0, %v1093_v0 }
  0x9b   : > { %1021 = vmatprep.subr.bf16.mxu1 %v1093_v0 }
  0xa5   : > { %1012 = vmatmul.mubr.msk.bf16.vlgmr.msra.gmra.mrb[0].mxu1 %vm259_vm3, %v529_v35 }
  0xa6   : > { %1022 = vmatpush3.bf16.msra.mxu1 %v1070_v36  ;;  %1023 = vmatprep.mubr.msk.bf16.mxu1 %vm1094_vm0, %v1093_v0 }
  0xb1   : > { %1024 = vmatmul.mubr.msk.bf16.vlgmr.msra.gmra.mrb[0].mxu1 %vm259_vm3, %v659_v37 }
 0x111   : > { %v646_v38 = vpop.f32.mrb[0].mxu0 }
 0x112   : > { %v1019_v39 = vpop.f32.mrb[1].mxu0 }
 0x113   : > { %v649_v40 = vpop.f32.mrb[2].mxu0 }
 0x114   : > { %v1020_v41 = vpop.f32.mrb[3].mxu0 }
 0x184   : > { %v703_v42 = vpop.f32.mrb[0].mxu1 }
 0x185   : > { %714 = vrot.lane.b32.xlu0 %v703_v42, %s1096_s16  ;;  %v1025_v43 = vpop.f32.mrb[1].mxu1 }
 0x186   : > { %v706_v44 = vpop.f32.mrb[2].mxu1 }
 0x187   : > { %716 = vrot.lane.b32.xlu1 %v706_v44, %s1096_s16  ;;  %v1026_v45 = vpop.f32.mrb[3].mxu1  ;;  %v951_v44 = vld [vmem:[%s1238_s3] ss:$0 sm:$0xff] }
 0x1f7   : > { %v715_v47 = vpop.permute.xlu0 %714 }
 0x1f8   : > { %v720_v48 = vsel %vm259_vm3, %v646_v38, %v715_v47  ;;  %v952_v47 = vld [vmem:[%s1239_s4] ss:$0 sm:$0xff] }
 0x1f9   : > { %v729_v49 = vadd.f32 %v950_v46, %v720_v48  ;;  %v717_v50 = vpop.permute.xlu1 %716 }
 0x1fa   : > { %v721_v51 = vsel %vm259_vm3, %v649_v40, %v717_v50 }
 0x1fb   : > { %v731_v52 = vmul.f32 %v729_v49, %v729_v49  ;;  %v730_v53 = vadd.f32 %v950_v46, %v721_v51 }
 0x1fd   : > { %v733_v54 = vmul.f32 %v731_v52, %v729_v49  ;;  %v732_v55 = vmul.f32 %v730_v53, %v730_v53 }
 0x1ff   : > { %v735_v56 = vmul.f32 0.044715, %v733_v54  ;;  %v734_v57 = vmul.f32 %v732_v55, %v730_v53 }
 0x201   : > { %v737_v58 = vadd.f32 %v735_v56, %v729_v49  ;;  %v736_v59 = vmul.f32 0.044715, %v734_v57 }
 0x203   : > { %v739_v60 = vmul.f32 0.7978846, %v737_v58  ;;  %v738_v61 = vadd.f32 %v736_v59, %v730_v53 }
 0x205   : > { %1075 = vtanh.f32 %v739_v60  ;;  %v740_v62 = vmul.f32 0.7978846, %v738_v61  ;;  %v851_v60 = vld [vmem:[%s224_s28 + $0x4] sm:$0xf] }
 0x207   : > { %1077 = vtanh.f32 %v740_v62 }
 0x20f   : > { %v1076_v63 = vpop.eup %1075 }
 0x210   : > { %v743_v0 = vadd.f32 1.0, %v1076_v63 }
 0x211   : > { %v1078_v1 = vpop.eup %1077 }
 0x212   : > { %v744_v3 = vadd.f32 1.0, %v1078_v1  ;;  %v745_v5 = vmul.f32 0.5, %v743_v0 }
 0x214   : > { %v746_v7 = vmul.f32 0.5, %v744_v3  ;;  %v747_v8 = vmul.f32 %v745_v5, %v729_v49 }
 0x216   : > { %v748_v10 = vmul.f32 %v746_v7, %v730_v53  ;;  %v752_v13 = vrot.slane %v747_v8, 6 }
 0x218   : > { %v753_v12 = vrot.slane %v748_v10, 6  ;;  %v758_v20 = vadd.f32 %v752_v13, %v229_v14 }
 0x21a   : > { %v760_v15 = vadd.f32 %v753_v12, %v231_v9  ;;  %v754_v16 = vsel %vm751_vm4, %v752_v13, %v753_v12  ;;  %v764_v2 = vsel %vm763_vm7, %v758_v20, 0.0 }
 0x21b   : > { %v759_v17 = vadd.f32 %v754_v16, %v230_v11 }
 0x21c   : > { %v772_v18 = vsel %vm771_vm5, %v760_v15, 0.0 }
 0x21d   : > { %773 = vadd.xlane.f32.xlu1 %v772_v18  ;;  %v768_v19 = vsel %vm767_vm6, %v759_v17, 0.0 }
 0x21e   : > { %769 = vadd.xlane.f32.xlu0 %v768_v19 }
 0x222   : > { %765 = vadd.xlane.f32.xlu0 %v764_v2 }
 0x2aa   : > { %v774_v6 = vpop.xlane.xlu1 %773 }
 0x2ab   : > { %v778_v21 = vmul.f32 0.03125, %v774_v6  ;;  %v770_v22 = vpop.xlane.xlu0 %769 }
 0x2ac   : > { %v777_v23 = vmul.f32 0.03125, %v770_v22 }
 0x2ad   : > { %v781_v4 = vsub.f32 %v760_v15, %v778_v21 }
 0x2ae   : > { %v780_v24 = vsub.f32 %v759_v17, %v777_v23 }
 0x2af   : > { %v766_v25 = vpop.xlane.xlu0 %765  ;;  %v784_v26 = vmul.f32 %v781_v4, %v781_v4 }
 0x2b0   : > { %v776_v27 = vmul.f32 0.03125, %v766_v25  ;;  %v783_v28 = vmul.f32 %v780_v24, %v780_v24 }
 0x2b1   : > { %v791_v29 = vsel %vm771_vm5, %v784_v26, 0.0 }
 0x2b2   : > { %v779_v30 = vsub.f32 %v758_v20, %v776_v27  ;;  %792 = vadd.xlane.f32.xlu1 %v791_v29  ;;  %v788_v31 = vsel %vm767_vm6, %v783_v28, 0.0 }
 0x2b3   : > { %789 = vadd.xlane.f32.xlu0 %v788_v31 }
 0x2b4   : > { %v782_v32 = vmul.f32 %v779_v30, %v779_v30 }
 0x2b6   : > { %v785_v33 = vsel %vm763_vm7, %v782_v32, 0.0 }
 0x2b7   : > { %786 = vadd.xlane.f32.xlu0 %v785_v33 }
 0x33f   : > { %v793_v34 = vpop.xlane.xlu1 %792 }
 0x340   : > { %v796_v35 = vmul.f32 0.03125, %v793_v34  ;;  %v790_v36 = vpop.xlane.xlu0 %789 }
 0x341   : > { %v795_v37 = vmul.f32 0.03125, %v790_v36 }
 0x342   : > { %v799_v38 = vadd.f32 1e-05, %v796_v35 }
 0x343   : > { %v798_v39 = vadd.f32 1e-05, %v795_v37 }
 0x344   : > { %1079 = vrsqrt.f32 %v799_v38  ;;  %v787_v40 = vpop.xlane.xlu0 %786 }
 0x345   : > { %1081 = vrsqrt.f32 %v798_v39  ;;  %v794_v41 = vmul.f32 0.03125, %v787_v40 }
 0x347   : > { %v797_v42 = vadd.f32 1e-05, %v794_v41 }
 0x349   : > { %1083 = vrsqrt.f32 %v797_v42 }
 0x34e   : > { %v1080_v43 = vpop.eup %1079 }
 0x34f   : > { %v1082_v45 = vpop.eup %1081  ;;  %v805_v46 = vmul.f32 %v1080_v43, %v781_v4 }
 0x350   : > { %v804_v48 = vmul.f32 %v1082_v45, %v780_v24 }
 0x351   : > { %v814_v49 = vmul.f32 %v951_v44, %v805_v46 }
 0x352   : > { %v813_v50 = vmul.f32 %v951_v44, %v804_v48 }
 0x353   : > { %v1084_v51 = vpop.eup %1083  ;;  %v823_v52 = vadd.f32 %v952_v47, %v814_v49 }
 0x354   : > { %v822_v53 = vadd.f32 %v952_v47, %v813_v50  ;;  %v803_v54 = vmul.f32 %v1084_v51, %v779_v30 }
 0x355   : > { %v962_v55 = vpack.c.bf16 %v823_v52, %v823_v52 }
 0x356   : > { %v961_v56 = vpack.c.bf16 %v822_v53, %v822_v53  ;;  %v812_v57 = vmul.f32 %v951_v44, %v803_v54 }
 0x357   : > { %v842_v61 = vrot.slane %v962_v55, 5 }
 0x358   : > { %v839_v58 = vrot.slane %v961_v56, 5  ;;  %v821_v59 = vadd.f32 %v952_v47, %v812_v57 }
 0x35a   : > { %v841_v62 = vrot.slane %v839_v58, 4  ;;  %v960_v63 = vpack.c.bf16 %v821_v59, %v821_v59 }
 0x35c   : > { %v843_v0 = vsel %vm836_vm12, %v841_v62, %v842_v61  ;;  %v956_v1 = vrot.slane %v960_v63, 9 }
 0x35d   : > { %v852_v3 = vsel %vm850_vm13, %v843_v0, %v851_v60 }
 0x35e   : > { %853 = vst [vmem:[%s224_s28 + $0x4] sm:$0xf] %v852_v3  ;;  %v840_v5 = vsel %vm836_vm12, %v956_v1, %v839_v58 }
 0x35f   : > { %847 = vst.msk [vmem:[%s224_s28] sm:$0xf] %vm846_vm10, %v840_v5 }
 0x360 PF: > { %s15_s18 = sadd.s32 1, %s1091_s18  }
 0x361   : > { %p12_p4 = scmp.ge.s32.totalorder %s15_s18, 4  }
 0x363   :  { %14 = sbr.rel (!%p12_p4) target bundleno = 1 (0x1), region = 77 }

// kernel: model_forward.9
= control target key start
LH: loop header
LB: loop body
LE: loop exit
PB: predicated region body
PF: predicated region fallthrough
CT: control target
= control target key end

     0   :  { %s1811_s25 = smov 0   ;;  %s2019_s0 = inlined_call_operand.vmem [shape: bf16[2,15,32], index: 0, kind: input, shape index: {}]   ;;  %s2020_s1 = inlined_call_operand.vmem [shape: bf16[32,96], index: 1, kind: input, shape index: {}]   ;;  %s2021_s2 = inlined_call_operand.vmem [shape: f32[1,96], index: 2, kind: input, shape index: {}]   ;;  %s2022_s3 = inlined_call_operand.vmem [shape: bf16[32,32], index: 3, kind: input, shape index: {}]   ;;  %s2023_s4 = inlined_call_operand.vmem [shape: f32[1,32], index: 4, kind: input, shape index: {}]   ;;  %s2024_s5 = inlined_call_operand.vmem [shape: f32[1,32], index: 5, kind: input, shape index: {}]   ;;  %s2025_s6 = inlined_call_operand.vmem [shape: f32[1,32], index: 6, kind: input, shape index: {}]   ;;  %s2026_s7 = inlined_call_operand.vmem [shape: bf16[32,64], index: 7, kind: input, shape index: {}]   ;;  %s2027_s8 = inlined_call_operand.vmem [shape: f32[1,64], index: 8, kind: input, shape index: {}]   ;;  %s2028_s9 = inlined_call_operand.vmem [shape: bf16[64,32], index: 9, kind: input, shape index: {}]   ;;  %s2029_s10 = inlined_call_operand.vmem [shape: f32[1,32], index: 10, kind: input, shape index: {}]   ;;  %s2030_s11 = inlined_call_operand.vmem [shape: f32[1,32], index: 11, kind: input, shape index: {}]   ;;  %s2031_s12 = inlined_call_operand.vmem [shape: f32[1,32], index: 12, kind: input, shape index: {}]   ;;  %s2032_s13 = inlined_call_operand.vmem [shape: bf16[2,15,32], index: 13, kind: output, shape index: {}]  }
   0x1 LB: > { %s1458_s26 = sadd.s32 4294967295, %s1722_s25   ;;  %p1462_p0 = scmp.ge.s32.totalorder %s1722_s25, 1  ;;  %s1722_s25 = sphi %s1811_s25, %s23_s25  }
   0x2   : > { %p387_p1 = scmp.lt.s32.totalorder %s1722_s25, 3 }
   0x4   : > { %p388_p2 = pnand %p1462_p0, %p387_p1 }
   0x5   : > { %v1660_v0 = vld [vmem:[%s2020_s1] sm:$0xff] (!%p388_p2)   ;;  %v1724_v1 = vmov (!%p388_p2), 0.0   ;;  %v1661_v2 = vld [vmem:[%s2020_s1 + $0x8] sm:$0xff] (!%p388_p2)   ;;  %vm1725_vm0 = vmmov (!%p388_p2), 0   ;;  %p431_p3 = scmp.lt.s32.totalorder (!%p388_p2), %s1458_s26, 1  ;;  %vm474_vm1 = vcmask (!%p388_p2), 261120  }
   0x6   : > { %391 = sbr.rel (%p388_p2) target bundleno = 2606 (0xa2e), region = 72  ;;  %1536 = vmatprep.subr.bf16.mxu0 (!%p388_p2), %v1724_v1  ;;  %1544 = vmatprep.subr.bf16.mxu1 (!%p388_p2), %v1724_v1  ;;  %v1467_v4 = vld [vmem:[%s2021_s2] ss:$0 sm:$0xff] (!%p388_p2)  ;;  %s1726_s20 = smov (!%p388_p2), 96   ;;  %vm526_vm2 = vcmask (!%p388_p2), 64512   ;;  %vm574_vm3 = vcmask (!%p388_p2), 121856  }
   0x7   : > { %1537 = vmatpush3.bf16.msra.mxu0 (!%p388_p2), %v1660_v0  ;;  %1540 = vmatprep.mubr.msk.bf16.mxu0 (!%p388_p2), %vm1725_vm0, %v1724_v1  ;;  %s1727_s21 = smov (!%p388_p2), 120   ;;  %s1728_s22 = smov (!%p388_p2), 88   ;;  %vm578_vm4 = vcmask (!%p388_p2), 120832   ;;  %vm604_vm5 = vcmask (!%p388_p2), 1046528   ;;  %vm605_vm6 = vcmask (!%p388_p2), 1047552   ;;  %vm1048_vm7 = vcmask (!%p388_p2), 130048  }
   0x8   : > { %1538 = vmatprep.subr.bf16.mxu0 (!%p388_p2), %v1724_v1  ;;  %1546 = vmatprep.mubr.msk.bf16.mxu1 (!%p388_p2), %vm1725_vm0, %v1724_v1  ;;  %s1729_s23 = smov (!%p388_p2), 80   ;;  %s1730_s24 = smov (!%p388_p2), 112   ;;  %vm1051_vm8 = vcmask (!%p388_p2), 195584   ;;  %vm1129_vm9 = vcmask (!%p388_p2), 260096   ;;  %vm1296_vm10 = vcmask (!%p388_p2), 523264   ;;  %vm1395_vm11 = vcmask (!%p388_p2), 257024  }
   0x9   : > { %s1731_s27 = smov (!%p388_p2), 72   ;;  %s1732_s28 = smov (!%p388_p2), 104   ;;  %vm1398_vm12 = vsmask.f32 (!%p388_p2), 3328 }
   0xa   : > { %s1733_s29 = smov (!%p388_p2), 64   ;;  %s1734_s30 = smov (!%p388_p2), 56   ;;  %vm1399_vm13 = vmand (!%p388_p2), %vm1395_vm11, %vm1398_vm12 }
   0xb   : > { %1539 = vmatpush3.bf16.msra.mxu0 (!%p388_p2), %v1661_v2  ;;  %s1735_s15 = smov (!%p388_p2), 48   ;;  %s1736_s16 = smov (!%p388_p2), 40  }
   0xc   : > { %1550 = vmatprep.subr.bf16.mxu0 (!%p388_p2), %v1724_v1  ;;  %s1738_s19 = smov (!%p388_p2), 8  }
   0xd   : > { %s2034_s26 = smov (!%p431_p3, %s1458_s26), 1 }
   0xe   : > { %s1502_s14 = sshll.u32 %s2034_s26, 3 }
   0xf   : > { %s435_s17 = scalar_lea.vmem %s2019_s0, %s1502_s14 }
  0x10   : > { %v1841_v3 = vld [vmem:[%s435_s17] sm:$0xff]  }
  0x11   : > { %1541 = vmatmul.mubr.msk.bf16.vlgmr.msra.gmra.mrb[0].mxu0 %vm474_vm1, %v1841_v3 }
  0x12   : > { %1552 = vmatprep.mubr.msk.bf16.mxu0 %vm1725_vm0, %v1724_v1 }
  0xe4   : > { %v512_v5 = vpop.f32.mrb[0].mxu0 }
  0xe5   : > { %v513_v6 = vadd.f32 %v1467_v4, %v512_v5  ;;  %v1542_v7 = vpop.f32.mrb[1].mxu0 }
  0xe6   : > { %v515_v8 = vpop.f32.mrb[2].mxu0 }
  0xe7   : > { %v516_v9 = vadd.f32 %v1467_v4, %v515_v8  ;;  %v1543_v10 = vpop.f32.mrb[3].mxu0  ;;  %v519_v11 = vmul.f32 0.35355338, %v513_v6 }
  0xe9   : > { %v520_v12 = vmul.f32 0.35355338, %v516_v9  ;;  %v1850_v13 = vpack.c.bf16 %v516_v9, %v513_v6 }
  0xeb   : > { %v521_v14 = vpack.c.bf16 %v520_v12, %v519_v11  ;;  %524 = vrot.lane.b32.xlu0 %v1850_v13, %s1726_s20 }
  0xed   : > { %653 = vrot.lane.b32.xlu1 %v521_v14, %s1727_s21 }
  0xef   : > { %655 = vrot.lane.b32.xlu0 %v1850_v13, %s1728_s22  ;;  %s1739_s22 = smov 16  }
  0xf1   : > { %778 = vrot.lane.b32.xlu1 %v1850_v13, %s1729_s23  ;;  %s1740_s23 = smov 24  }
  0xf3   : > { %776 = vrot.lane.b32.xlu0 %v521_v14, %s1730_s24  ;;  %s440_s24 = scalar_lea.vmem %s2032_s13, %s1502_s14 }
  0xf5   : > { %901 = vrot.lane.b32.xlu1 %v1850_v13, %s1731_s27 }
  0xf7   : > { %899 = vrot.lane.b32.xlu0 %v521_v14, %s1732_s28 }
 0x15d   : > { %v525_v15 = vpop.permute.xlu0 %524 }
 0x15e   : > { %v531_v16 = vsel %vm526_vm2, %v525_v15, 0 }
 0x15f   : > { %1545 = vmatpush3.bf16.xpose.msra.mxu1 %v531_v16  ;;  %v654_v18 = vpop.permute.xlu1 %653 }
 0x160   : > { %1556 = vmatprep.subr.bf16.mxu1 %v1724_v1 }
 0x161   : > { %v656_v17 = vpop.permute.xlu0 %655 }
 0x162   : > { %v661_v19 = vsel %vm526_vm2, %v656_v17, 0 }
 0x163   : > { %v779_v20 = vpop.permute.xlu1 %778 }
 0x164   : > { %v784_v21 = vsel %vm526_vm2, %v779_v20, 0 }
 0x165   : > { %v777_v23 = vpop.permute.xlu0 %776 }
 0x166   : > { %1547 = vmatmul.mubr.msk.bf16.vlgmr.msra.gmra.mrb[0].mxu1 %vm526_vm2, %v521_v14 }
 0x167   : > { %1557 = vmatpush3.bf16.xpose.msra.mxu1 %v661_v19  ;;  %1558 = vmatprep.mubr.msk.bf16.mxu1 %vm1725_vm0, %v1724_v1  ;;  %v902_v22 = vpop.permute.xlu1 %901 }
 0x168   : > { %1568 = vmatprep.subr.bf16.mxu1 %v1724_v1  ;;  %v907_v24 = vsel %vm526_vm2, %v902_v22, 0 }
 0x169   : > { %v900_v25 = vpop.permute.xlu0 %899 }
 0x16e   : > { %1559 = vmatmul.mubr.msk.bf16.vlgmr.msra.gmra.mrb[4].mxu1 %vm526_vm2, %v654_v18 }
 0x16f   : > { %1569 = vmatpush3.bf16.xpose.msra.mxu1 %v784_v21  ;;  %1570 = vmatprep.mubr.msk.bf16.mxu1 %vm1725_vm0, %v1724_v1 }
 0x170   : > { %1580 = vmatprep.subr.bf16.mxu1 %v1724_v1 }
 0x176   : > { %1571 = vmatmul.mubr.msk.bf16.vlgmr.msra.gmra.mrb[8].mxu1 %vm526_vm2, %v777_v23 }
 0x177   : > { %1581 = vmatpush3.bf16.xpose.msra.mxu1 %v907_v24  ;;  %1582 = vmatprep.mubr.msk.bf16.mxu1 %vm1725_vm0, %v1724_v1 }
 0x178   : > { %1592 = vmatprep.subr.bf16.mxu1 %v1724_v1 }
 0x17e   : > { %1583 = vmatmul.mubr.msk.bf16.vlgmr.msra.gmra.mrb[12].mxu1 %vm526_vm2, %v900_v25 }
 0x17f   : > { %1596 = vmatprep.mubr.msk.bf16.mxu1 %vm1725_vm0, %v1724_v1 }
 0x239   : > { %v567_v26 = vpop.f32.mrb[0].mxu1 }
 0x23a   : > { %v1548_v27 = vpop.f32.mrb[1].mxu1  ;;  %v575_v28 = vsel %vm574_vm3, %v567_v26, -inf }
 0x23b   : > { %576 = vmax.xlane.f32.xlu1 %v575_v28  ;;  %v570_v29 = vpop.f32.mrb[2].mxu1 }
 0x23c   : > { %v1549_v30 = vpop.f32.mrb[3].mxu1  ;;  %v579_v31 = vsel %vm578_vm4, %v570_v29, -inf }
 0x23d   : > { %580 = vmax.xlane.f32.xlu0 %v579_v31 }
 0x241   : > { %v1878_v32 = vpop.f32.mrb[4].mxu1 }
 0x242   : > { %v1560_v33 = vpop.f32.mrb[5].mxu1  ;;  %v704_v34 = vsel %vm574_vm3, %v1878_v32, -inf }
 0x243   : > { %705 = vmax.xlane.f32.xlu0 %v704_v34  ;;  %v700_v35 = vpop.f32.mrb[6].mxu1 }
 0x244   : > { %v1561_v36 = vpop.f32.mrb[7].mxu1  ;;  %v707_v37 = vsel %vm578_vm4, %v700_v35, -inf }
 0x245   : > { %708 = vmax.xlane.f32.xlu1 %v707_v37 }
 0x249   : > { %v1883_v38 = vpop.f32.mrb[8].mxu1 }
 0x24a   : > { %v1572_v39 = vpop.f32.mrb[9].mxu1  ;;  %v827_v40 = vsel %vm574_vm3, %v1883_v38, -inf }
 0x24b   : > { %828 = vmax.xlane.f32.xlu0 %v827_v40  ;;  %v823_v41 = vpop.f32.mrb[10].mxu1 }
 0x24c   : > { %v1573_v42 = vpop.f32.mrb[11].mxu1  ;;  %v830_v43 = vsel %vm578_vm4, %v823_v41, -inf }
 0x24d   : > { %831 = vmax.xlane.f32.xlu1 %v830_v43 }
 0x251   : > { %v943_v44 = vpop.f32.mrb[12].mxu1 }
 0x252   : > { %v1584_v45 = vpop.f32.mrb[13].mxu1  ;;  %v950_v46 = vsel %vm574_vm3, %v943_v44, -inf }
 0x253   : > { %951 = vmax.xlane.f32.xlu0 %v950_v46  ;;  %v946_v47 = vpop.f32.mrb[14].mxu1 }
 0x254   : > { %v1585_v48 = vpop.f32.mrb[15].mxu1  ;;  %v953_v49 = vsel %vm578_vm4, %v946_v47, -inf }
 0x255   : > { %954 = vmax.xlane.f32.xlu1 %v953_v49 }
 0x2c8   : > { %v577_v50 = vpop.xlane.xlu1 %576 }
 0x2c9   : > { %v582_v51 = vsub.f32 %v567_v26, %v577_v50 }
 0x2ca   : > { %v581_v52 = vpop.xlane.xlu0 %580 }
 0x2cb   : > { %v584_v53 = vmul.f32 1.442695, %v582_v51  ;;  %v583_v54 = vsub.f32 %v570_v29, %v581_v52  ;;  %v1737_v29 = vmov 65535  }
 0x2cc   : > { %v606_v30 = vsel %vm604_vm5, 4294967295, %v1737_v29 }
 0x2cd   : > { %1672 = vpow2.f32 %v584_v53  ;;  %v586_v55 = vmul.f32 1.442695, %v583_v54  ;;  %v607_v33 = vsel %vm605_vm6, %v606_v30, 0 }
 0x2cf   : > { %1674 = vpow2.f32 %v586_v55 }
 0x2d0   : > { %v706_v60 = vpop.xlane.xlu0 %705 }
 0x2d1   : > { %v710_v21 = vsub.f32 %v1878_v32, %v706_v60 }
 0x2d2   : > { %v709_v56 = vpop.xlane.xlu1 %708 }
 0x2d3   : > { %v711_v57 = vsub.f32 %v700_v35, %v709_v56  ;;  %v712_v22 = vmul.f32 1.442695, %v710_v21 }
 0x2d5   : > { %v714_v58 = vmul.f32 1.442695, %v711_v57 }
 0x2d7   : > { %v1890_v59 = vpop.eup %1672  ;;  %1676 = vpow2.f32 %v714_v58 }
 0x2d8   : > { %v588_v61 = vsel %vm574_vm3, %v1890_v59, 0.0  ;;  %v829_v4 = vpop.xlane.xlu0 %828 }
 0x2d9   : > { %v1894_v62 = vpop.eup %1674  ;;  %589 = vadd.xlane.f32.xlu0 %v588_v61  ;;  %v833_v23 = vsub.f32 %v1883_v38, %v829_v4 }
 0x2da   : > { %v832_v63 = vpop.xlane.xlu1 %831  ;;  %v591_v0 = vsel %vm578_vm4, %v1894_v62, 0.0 }
 0x2db   : > { %v834_v2 = vsub.f32 %v823_v41, %v832_v63  ;;  %592 = vadd.xlane.f32.xlu1 %v591_v0  ;;  %v835_v24 = vmul.f32 1.442695, %v833_v23 }
 0x2dd   : > { %v837_v5 = vmul.f32 1.442695, %v834_v2 }
 0x2df   : > { %1678 = vpow2.f32 %v837_v5 }
 0x2e0   : > { %v952_v6 = vpop.xlane.xlu0 %951 }
 0x2e1   : > { %v1898_v7 = vpop.eup %1676  ;;  %v956_v8 = vsub.f32 %v943_v44, %v952_v6 }
 0x2e2   : > { %v955_v9 = vpop.xlane.xlu1 %954  ;;  %v719_v10 = vsel %vm578_vm4, %v1898_v7, 0.0 }
 0x2e3   : > { %v958_v11 = vmul.f32 1.442695, %v956_v8  ;;  %v957_v12 = vsub.f32 %v946_v47, %v955_v9  ;;  %720 = vadd.xlane.f32.xlu1 %v719_v10 }
 0x2e5   : > { %1680 = vpow2.f32 %v958_v11  ;;  %v960_v14 = vmul.f32 1.442695, %v957_v12  ;;  %v1663_v12 = vld [vmem:[%s2022_s3] sm:$0xff]  }
 0x2e6   : > { %1593 = vmatpush3.bf16.msra.mxu1 %v1663_v12  ;;  %v1484_v12 = vld [vmem:[%s2024_s5] ss:$0 sm:$0xff] }
 0x2e7   : > { %1682 = vpow2.f32 %v960_v14  ;;  %1594 = vmatprep.subr.bf16.mxu1 %v1724_v1 }
 0x2e8   : > { %1684 = vpow2.f32 %v712_v22 }
 0x2e9   : > { %v1902_v15 = vpop.eup %1678  ;;  %1686 = vpow2.f32 %v835_v24 }
 0x2ea   : > { %v842_v16 = vsel %vm578_vm4, %v1902_v15, 0.0 }
 0x2eb   : > { %843 = vadd.xlane.f32.xlu1 %v842_v16 }
 0x2ef   : > { %v1906_v17 = vpop.eup %1680  ;;  %599 = vrot.lane.b32.xlu0 %v1850_v13, %s1733_s29 }
 0x2f0   : > { %v962_v18 = vsel %vm574_vm3, %v1906_v17, 0.0 }
 0x2f1   : > { %v1911_v19 = vpop.eup %1682  ;;  %963 = vadd.xlane.f32.xlu1 %v962_v18  ;;  %v1664_v18 = vld [vmem:[%s2022_s3 + $0x8] sm:$0xff]  }
 0x2f2   : > { %v965_v20 = vsel %vm578_vm4, %v1911_v19, 0.0  ;;  %v1685_v25 = vpop.eup %1684  ;;  %1595 = vmatpush3.bf16.msra.mxu1 %v1664_v18 }
 0x2f3   : > { %v716_v26 = vsel %vm574_vm3, %v1685_v25, 0.0  ;;  %v1687_v27 = vpop.eup %1686  ;;  %1608 = vmatprep.subr.bf16.mxu1 %v1724_v1 }
 0x2f4   : > { %v839_v28 = vsel %vm574_vm3, %v1687_v27, 0.0 }
 0x2f5   : > { %966 = vadd.xlane.f32.xlu1 %v965_v20 }
 0x306   : > { %727 = vrot.lane.b32.xlu1 %v1850_v13, %s1734_s30 }
 0x30e   : > { %717 = vadd.xlane.f32.xlu0 %v716_v26 }
 0x312   : > { %840 = vadd.xlane.f32.xlu0 %v839_v28 }
 0x328   : > { %850 = vrot.lane.b32.xlu0 %v1850_v13, %s1735_s15 }
 0x32c   : > { %973 = vrot.lane.b32.xlu0 %v1850_v13, %s1736_s16 }
 0x366   : > { %v590_v31 = vpop.xlane.xlu0 %589 }
 0x367   : > { %1688 = vrcp.f32 %v590_v31 }
 0x368   : > { %v593_v32 = vpop.xlane.xlu1 %592 }
 0x369   : > { %1690 = vrcp.f32 %v593_v32 }
 0x36a   : > { %v600_v34 = vpop.permute.xlu0 %599 }
 0x36b   : > { %v609_v35 = vand.u32 %v607_v33, %v600_v34 }
 0x36d   : > { %1551 = vmatpush3.bf16.msra.mxu0 %v609_v35 }
 0x36e   : > { %1562 = vmatprep.subr.bf16.mxu0 %v1724_v1 }
 0x370   : > { %v721_v39 = vpop.xlane.xlu1 %720 }
 0x371   : > { %v1689_v36 = vpop.eup %1688  ;;  %1692 = vrcp.f32 %v721_v39 }
 0x372   : > { %v596_v38 = vmul.f32 %v1689_v36, %v1890_v59 }
 0x373   : > { %v1691_v37 = vpop.eup %1690 }
 0x374   : > { %v597_v13 = vmul.f32 %v1691_v37, %v1894_v62 }
 0x376   : > { %v598_v40 = vpack.c.bf16 %v597_v13, %v596_v38 }
 0x378   : > { %1553 = vmatmul.mubr.msk.bf16.vlgmr.msra.gmra.mrb[4].mxu0 %vm574_vm3, %v598_v40  ;;  %v844_v41 = vpop.xlane.xlu1 %843 }
 0x379   : > { %1564 = vmatprep.mubr.msk.bf16.mxu0 %vm1725_vm0, %v1724_v1 }
 0x37b   : > { %v1693_v48 = vpop.eup %1692 }
 0x37c   : > { %v725_v50 = vmul.f32 %v1693_v48, %v1898_v7 }
 0x37e   : > { %v964_v42 = vpop.xlane.xlu1 %963 }
 0x382   : > { %v967_v43 = vpop.xlane.xlu1 %966 }
 0x386   : > { %v728_v44 = vpop.permute.xlu1 %727 }
 0x387   : > { %v733_v45 = vand.u32 %v728_v44, %v607_v33 }
 0x389   : > { %1563 = vmatpush3.bf16.msra.mxu0 %v733_v45 }
 0x38a   : > { %1574 = vmatprep.subr.bf16.mxu0 %v1724_v1 }
 0x39b   : > { %v718_v46 = vpop.xlane.xlu0 %717 }
 0x39c   : > { %1694 = vrcp.f32 %v718_v46 }
 0x39f   : > { %v841_v47 = vpop.xlane.xlu0 %840 }
 0x3a0   : > { %1696 = vrcp.f32 %v841_v47  ;;  %v445_v47 = vunpack.c.h.bf16 %v1841_v3 }
 0x3a1   : > { %1698 = vrcp.f32 %v844_v41 }
 0x3a2   : > { %1700 = vrcp.f32 %v967_v43  ;;  %v444_v43 = vunpack.c.l.bf16 %v1841_v3 }
 0x3a3   : > { %v851_v52 = vpop.permute.xlu0 %850  ;;  %1702 = vrcp.f32 %v964_v42  ;;  %v1480_v42 = vld [vmem:[%s2023_s4] ss:$0 sm:$0xff] }
 0x3a4   : > { %v856_v55 = vand.u32 %v851_v52, %v607_v33 }
 0x3a6   : > { %v1695_v49 = vpop.eup %1694 }
 0x3a7   : > { %v724_v51 = vmul.f32 %v1695_v49, %v1685_v25  ;;  %v974_v59 = vpop.permute.xlu0 %973 }
 0x3a8   : > { %v979_v62 = vand.u32 %v974_v59, %v607_v33 }
 0x3a9   : > { %v726_v53 = vpack.c.bf16 %v725_v50, %v724_v51 }
 0x3aa   : > { %v1697_v54 = vpop.eup %1696 }
 0x3ab   : > { %1565 = vmatmul.mubr.msk.bf16.vlgmr.msra.gmra.mrb[8].mxu0 %vm574_vm3, %v726_v53  ;;  %v1699_v56 = vpop.eup %1698  ;;  %v847_v57 = vmul.f32 %v1697_v54, %v1687_v27 }
 0x3ac   : > { %1575 = vmatpush3.bf16.msra.mxu0 %v856_v55  ;;  %1576 = vmatprep.mubr.msk.bf16.mxu0 %vm1725_vm0, %v1724_v1  ;;  %v848_v58 = vmul.f32 %v1699_v56, %v1902_v15  ;;  %v1701_v61 = vpop.eup %1700 }
 0x3ad   : > { %1586 = vmatprep.subr.bf16.mxu0 %v1724_v1  ;;  %v1703_v63 = vpop.eup %1702  ;;  %v971_v0 = vmul.f32 %v1701_v61, %v1911_v19 }
 0x3ae   : > { %v849_v60 = vpack.c.bf16 %v848_v58, %v847_v57  ;;  %v970_v2 = vmul.f32 %v1703_v63, %v1906_v17 }
 0x3b0   : > { %v972_v4 = vpack.c.bf16 %v971_v0, %v970_v2  ;;  %v1665_v0 = vld [vmem:[%s2026_s7] sm:$0xff]   ;;  %v1666_v2 = vld [vmem:[%s2026_s7 + $0x8] sm:$0xff]  }
 0x3b3   : > { %1577 = vmatmul.mubr.msk.bf16.vlgmr.msra.gmra.mrb[12].mxu0 %vm574_vm3, %v849_v60 }
 0x3b4   : > { %1587 = vmatpush3.bf16.msra.mxu0 %v979_v62  ;;  %1588 = vmatprep.mubr.msk.bf16.mxu0 %vm1725_vm0, %v1724_v1 }
 0x3b5   : > { %1600 = vmatprep.subr.bf16.mxu0 %v1724_v1 }
 0x3bb   : > { %1589 = vmatmul.mubr.msk.bf16.vlgmr.msra.gmra.mrb[16].mxu0 %vm574_vm3, %v972_v4 }
 0x3bc   : > { %1604 = vmatprep.mubr.msk.bf16.mxu0 %vm1725_vm0, %v1724_v1  ;;  %1601 = vmatpush3.bf16.msra.mxu0 %v1665_v0 }
 0x3bd   : > { %1602 = vmatprep.subr.bf16.mxu0 %v1724_v1 }
 0x3c0   : > { %1603 = vmatpush3.bf16.msra.mxu0 %v1666_v2 }
 0x44b   : > { %v645_v5 = vpop.f32.mrb[4].mxu0 }
 0x44c   : > { %v1554_v6 = vpop.f32.mrb[5].mxu0 }
 0x44d   : > { %v648_v7 = vpop.f32.mrb[6].mxu0 }
 0x44e   : > { %v1555_v8 = vpop.f32.mrb[7].mxu0 }
 0x47e   : > { %v769_v9 = vpop.f32.mrb[8].mxu0 }
 0x47f   : > { %v1566_v10 = vpop.f32.mrb[9].mxu0 }
 0x480   : > { %v772_v11 = vpop.f32.mrb[10].mxu0 }
 0x481   : > { %v1645_v14 = vpack.i.bf16 %v772_v11, %v769_v9  ;;  %v1567_v15 = vpop.f32.mrb[11].mxu0 }
 0x483   : > { %1646 = vrot.lane.b32.xlu1 %v1645_v14, %s1738_s19 }
 0x486   : > { %v892_v16 = vpop.f32.mrb[12].mxu0 }
 0x487   : > { %v1578_v17 = vpop.f32.mrb[13].mxu0 }
 0x488   : > { %v895_v19 = vpop.f32.mrb[14].mxu0  ;;  %v1485_v17 = vld [vmem:[%s2025_s6] ss:$0 sm:$0xff] }
 0x489   : > { %v1650_v20 = vpack.i.bf16 %v895_v19, %v892_v16  ;;  %v1579_v21 = vpop.f32.mrb[15].mxu0 }
 0x48b   : > { %1651 = vrot.lane.b32.xlu0 %v1650_v20, %s1739_s22 }
 0x48e   : > { %v1015_v22 = vpop.f32.mrb[16].mxu0 }
 0x48f   : > { %v1590_v23 = vpop.f32.mrb[17].mxu0 }
 0x490   : > { %v1018_v24 = vpop.f32.mrb[18].mxu0  ;;  %v1668_v23 = vld [vmem:[%s2028_s9 + $0x8] sm:$0xff]  }
 0x491   : > { %v1655_v25 = vpack.i.bf16 %v1018_v24, %v1015_v22  ;;  %v1591_v26 = vpop.f32.mrb[19].mxu0  ;;  %v1667_v22 = vld [vmem:[%s2028_s9] sm:$0xff]   ;;  %v1669_v24 = vld [vmem:[%s2028_s9 + $0x10] sm:$0xff]  }
 0x492   : > { %v1486_v26 = vld [vmem:[%s2027_s8] ss:$0 sm:$0xff] }
 0x493   : > { %1656 = vrot.lane.b32.xlu1 %v1655_v25, %s1740_s23  ;;  %v1670_v25 = vld [vmem:[%s2028_s9 + $0x18] sm:$0xff]  }
 0x4f5   : > { %v1647_v27 = vpop.permute.xlu1 %1646 }
 0x4f6   : > { %v1649_v29 = vunpack.i.h.bf16 %v1647_v27  ;;  %v1648_v30 = vunpack.i.l.bf16 %v1647_v27 }
 0x4f8   : > { %v1047_v34 = vsel %vm526_vm2, %v648_v7, %v1649_v29  ;;  %v1046_v35 = vsel %vm526_vm2, %v645_v5, %v1648_v30 }
 0x4fd   : > { %v1652_v28 = vpop.permute.xlu0 %1651 }
 0x4fe   : > { %v1654_v31 = vunpack.i.h.bf16 %v1652_v28  ;;  %v1653_v32 = vunpack.i.l.bf16 %v1652_v28 }
 0x500   : > { %v1050_v38 = vsel %vm1048_vm7, %v1047_v34, %v1654_v31  ;;  %v1049_v13 = vsel %vm1048_vm7, %v1046_v35, %v1653_v32 }
 0x505   : > { %v1657_v33 = vpop.permute.xlu1 %1656 }
 0x506   : > { %v1659_v36 = vunpack.i.h.bf16 %v1657_v33  ;;  %v1658_v37 = vunpack.i.l.bf16 %v1657_v33 }
 0x508   : > { %v1053_v39 = vsel %vm1051_vm8, %v1050_v38, %v1659_v36  ;;  %v1052_v40 = vsel %vm1051_vm8, %v1049_v13, %v1658_v37 }
 0x509   : > { %v1054_v41 = vpack.c.bf16 %v1053_v39, %v1052_v40 }
 0x50b   : > { %1597 = vmatmul.mubr.msk.bf16.vlgmr.msra.gmra.mrb[16].mxu1 %vm474_vm1, %v1054_v41 }
 0x50c   : > { %1616 = vmatprep.mubr.msk.bf16.mxu1 %vm1725_vm0, %v1724_v1  ;;  %1609 = vmatpush3.bf16.msra.mxu1 %v1667_v22 }
 0x50d   : > { %1610 = vmatprep.subr.bf16.mxu1 %v1724_v1 }
 0x510   : > { %1611 = vmatpush3.bf16.msra.mxu1 %v1668_v23 }
 0x511   : > { %1612 = vmatprep.subr.bf16.mxu1 %v1724_v1 }
 0x514   : > { %1613 = vmatpush3.bf16.msra.mxu1 %v1669_v24 }
 0x515   : > { %1614 = vmatprep.subr.bf16.mxu1 %v1724_v1 }
 0x518   : > { %1615 = vmatpush3.bf16.msra.mxu1 %v1670_v25 }
 0x5de   : > { %v1115_v44 = vpop.f32.mrb[16].mxu1 }
 0x5df   : > { %v1116_v45 = vadd.f32 %v1480_v42, %v1115_v44  ;;  %v1598_v46 = vpop.f32.mrb[17].mxu1 }
 0x5e0   : > { %v1118_v48 = vpop.f32.mrb[18].mxu1 }
 0x5e1   : > { %v1119_v49 = vadd.f32 %v1480_v42, %v1118_v48  ;;  %v1599_v50 = vpop.f32.mrb[19].mxu1  ;;  %v1122_v51 = vadd.f32 %v1116_v45, %v444_v43 }
 0x5e2   : > { %v1490_v50 = vld [vmem:[%s2029_s10] ss:$0 sm:$0xff] }
 0x5e3   : > { %v1126_v52 = vsel %vm474_vm1, %v1122_v51, 0.0  ;;  %v1123_v53 = vadd.f32 %v1119_v49, %v445_v47 }
 0x5e4   : > { %1127 = vadd.xlane.f32.xlu0 %v1126_v52 }
 0x5e5   : > { %v1130_v54 = vsel %vm1129_vm9, %v1123_v53, 0.0 }
 0x5e6   : > { %1131 = vadd.xlane.f32.xlu1 %v1130_v54 }
 0x671   : > { %v1128_v55 = vpop.xlane.xlu0 %1127 }
 0x672   : > { %v1134_v56 = vmul.f32 0.03125, %v1128_v55 }
 0x673   : > { %v1132_v57 = vpop.xlane.xlu1 %1131 }
 0x674   : > { %v1136_v58 = vsub.f32 %v1122_v51, %v1134_v56  ;;  %v1135_v59 = vmul.f32 0.03125, %v1132_v57 }
 0x676   : > { %v1137_v60 = vsub.f32 %v1123_v53, %v1135_v59  ;;  %v1138_v61 = vmul.f32 %v1136_v58, %v1136_v58 }
 0x678   : > { %v1140_v3 = vsel %vm474_vm1, %v1138_v61, 0.0  ;;  %v1139_v62 = vmul.f32 %v1137_v60, %v1137_v60 }
 0x679   : > { %1141 = vadd.xlane.f32.xlu0 %v1140_v3 }
 0x67a   : > { %v1143_v63 = vsel %vm1129_vm9, %v1139_v62, 0.0 }
 0x67d   : > { %1144 = vadd.xlane.f32.xlu0 %v1143_v63 }
 0x706   : > { %v1142_v4 = vpop.xlane.xlu0 %1141 }
 0x707   : > { %v1146_v5 = vmul.f32 0.03125, %v1142_v4 }
 0x709   : > { %v1148_v6 = vadd.f32 1e-05, %v1146_v5 }
 0x70a   : > { %v1145_v7 = vpop.xlane.xlu0 %1144 }
 0x70b   : > { %1704 = vrsqrt.f32 %v1148_v6  ;;  %v1147_v8 = vmul.f32 0.03125, %v1145_v7 }
 0x70d   : > { %v1149_v9 = vadd.f32 1e-05, %v1147_v8 }
 0x70f   : > { %1706 = vrsqrt.f32 %v1149_v9 }
 0x715   : > { %v1705_v10 = vpop.eup %1704 }
 0x716   : > { %v1152_v11 = vmul.f32 %v1705_v10, %v1136_v58 }
 0x718   : > { %v1160_v15 = vmul.f32 %v1484_v12, %v1152_v11 }
 0x719   : > { %v1707_v14 = vpop.eup %1706 }
 0x71a   : > { %v1153_v16 = vmul.f32 %v1707_v14, %v1137_v60  ;;  %v1168_v19 = vadd.f32 %v1485_v17, %v1160_v15 }
 0x71c   : > { %v1161_v18 = vmul.f32 %v1484_v12, %v1153_v16  ;;  %v1496_v16 = vld [vmem:[%s2030_s11] ss:$0 sm:$0xff] }
 0x71e   : > { %v1169_v20 = vadd.f32 %v1485_v17, %v1161_v18 }
 0x720   : > { %v1170_v21 = vpack.c.bf16 %v1169_v20, %v1168_v19 }
 0x722   : > { %1605 = vmatmul.mubr.msk.bf16.vlgmr.msra.gmra.mrb[20].mxu0 %vm474_vm1, %v1170_v21 }
 0x7f5   : > { %v1231_v27 = vpop.f32.mrb[20].mxu0 }
 0x7f6   : > { %v1232_v28 = vadd.f32 %v1486_v26, %v1231_v27  ;;  %v1606_v29 = vpop.f32.mrb[21].mxu0 }
 0x7f7   : > { %v1234_v30 = vpop.f32.mrb[22].mxu0 }
 0x7f8   : > { %v1238_v31 = vmul.f32 %v1232_v28, %v1232_v28  ;;  %v1235_v32 = vadd.f32 %v1486_v26, %v1234_v30  ;;  %v1607_v33 = vpop.f32.mrb[23].mxu0  ;;  %v1400_v26 = vld [vmem:[%s440_s24 + $0x4] sm:$0xf] }
 0x7fa   : > { %v1240_v34 = vmul.f32 %v1238_v31, %v1232_v28  ;;  %v1239_v35 = vmul.f32 %v1235_v32, %v1235_v32 }
 0x7fc   : > { %v1242_v36 = vmul.f32 0.044715, %v1240_v34  ;;  %v1241_v1 = vmul.f32 %v1239_v35, %v1235_v32 }
 0x7fe   : > { %v1244_v37 = vadd.f32 %v1242_v36, %v1232_v28  ;;  %v1243_v38 = vmul.f32 0.044715, %v1241_v1 }
 0x800   : > { %v1246_v13 = vmul.f32 0.7978846, %v1244_v37  ;;  %v1245_v39 = vadd.f32 %v1243_v38, %v1235_v32 }
 0x802   : > { %1708 = vtanh.f32 %v1246_v13  ;;  %v1247_v40 = vmul.f32 0.7978846, %v1245_v39 }
 0x804   : > { %1710 = vtanh.f32 %v1247_v40 }
 0x80c   : > { %v1709_v41 = vpop.eup %1708 }
 0x80d   : > { %v1250_v42 = vadd.f32 1.0, %v1709_v41 }
 0x80e   : > { %v1711_v43 = vpop.eup %1710 }
 0x80f   : > { %v1252_v44 = vmul.f32 0.5, %v1250_v42  ;;  %v1251_v45 = vadd.f32 1.0, %v1711_v43 }
 0x811   : > { %v1253_v46 = vmul.f32 0.5, %v1251_v45  ;;  %v1254_v47 = vmul.f32 %v1252_v44, %v1232_v28 }
 0x813   : > { %v1255_v48 = vmul.f32 %v1253_v46, %v1235_v32 }
 0x815   : > { %v1256_v49 = vpack.c.bf16 %v1255_v48, %v1254_v47 }
 0x817   : > { %1617 = vmatmul.mubr.msk.bf16.vlgmr.msra.gmra.mrb[20].mxu1 %vm1296_vm10, %v1256_v49 }
 0x8ea   : > { %v1334_v51 = vpop.f32.mrb[20].mxu1 }
 0x8eb   : > { %v1335_v52 = vadd.f32 %v1490_v50, %v1334_v51  ;;  %v1618_v53 = vpop.f32.mrb[21].mxu1 }
 0x8ec   : > { %v1337_v54 = vpop.f32.mrb[22].mxu1 }
 0x8ed   : > { %v1338_v55 = vadd.f32 %v1490_v50, %v1337_v54  ;;  %v1619_v56 = vpop.f32.mrb[23].mxu1  ;;  %v1341_v57 = vadd.f32 %v1335_v52, %v1168_v19  ;;  %v1497_v19 = vld [vmem:[%s2031_s12] ss:$0 sm:$0xff] }
 0x8ef   : > { %v1345_v58 = vsel %vm474_vm1, %v1341_v57, 0.0  ;;  %v1342_v59 = vadd.f32 %v1338_v55, %v1169_v20 }
 0x8f0   : > { %1346 = vadd.xlane.f32.xlu0 %v1345_v58 }
 0x8f1   : > { %v1348_v60 = vsel %vm1129_vm9, %v1342_v59, 0.0 }
 0x8f2   : > { %1349 = vadd.xlane.f32.xlu1 %v1348_v60 }
 0x97d   : > { %v1347_v61 = vpop.xlane.xlu0 %1346 }
 0x97e   : > { %v1351_v3 = vmul.f32 0.03125, %v1347_v61 }
 0x97f   : > { %v1350_v62 = vpop.xlane.xlu1 %1349 }
 0x980   : > { %v1353_v63 = vsub.f32 %v1341_v57, %v1351_v3  ;;  %v1352_v0 = vmul.f32 0.03125, %v1350_v62 }
 0x982   : > { %v1354_v2 = vsub.f32 %v1342_v59, %v1352_v0  ;;  %v1355_v4 = vmul.f32 %v1353_v63, %v1353_v63 }
 0x984   : > { %v1357_v5 = vsel %vm474_vm1, %v1355_v4, 0.0  ;;  %v1356_v6 = vmul.f32 %v1354_v2, %v1354_v2 }
 0x985   : > { %1358 = vadd.xlane.f32.xlu0 %v1357_v5 }
 0x986   : > { %v1360_v7 = vsel %vm1129_vm9, %v1356_v6, 0.0 }
 0x987   : > { %1361 = vadd.xlane.f32.xlu1 %v1360_v7 }
 0xa12   : > { %v1359_v8 = vpop.xlane.xlu0 %1358 }
 0xa13   : > { %v1363_v9 = vmul.f32 0.03125, %v1359_v8 }
 0xa14   : > { %v1362_v10 = vpop.xlane.xlu1 %1361 }
 0xa15   : > { %v1365_v11 = vadd.f32 1e-05, %v1363_v9  ;;  %v1364_v12 = vmul.f32 0.03125, %v1362_v10 }
 0xa17   : > { %1712 = vrsqrt.f32 %v1365_v11  ;;  %v1366_v14 = vadd.f32 1e-05, %v1364_v12 }
 0xa19   : > { %1714 = vrsqrt.f32 %v1366_v14 }
 0xa21   : > { %v1713_v15 = vpop.eup %1712 }
 0xa22   : > { %v1369_v17 = vmul.f32 %v1713_v15, %v1353_v63 }
 0xa23   : > { %v1715_v18 = vpop.eup %1714 }
 0xa24   : > { %v1377_v20 = vmul.f32 %v1496_v16, %v1369_v17  ;;  %v1370_v21 = vmul.f32 %v1715_v18, %v1354_v2 }
 0xa26   : > { %v1385_v22 = vadd.f32 %v1497_v19, %v1377_v20  ;;  %v1378_v23 = vmul.f32 %v1496_v16, %v1370_v21 }
 0xa28   : > { %v1504_v24 = vpack.c.bf16 %v1385_v22, %v1385_v22  ;;  %v1386_v25 = vadd.f32 %v1497_v19, %v1378_v23 }
 0xa2a   : > { %1396 = vst.msk [vmem:[%s440_s24] sm:$0xf] %vm1395_vm11, %v1504_v24  ;;  %v1505_v27 = vpack.c.bf16 %v1386_v25, %v1386_v25 }
 0xa2c   : > { %v1401_v28 = vsel %vm1399_vm13, %v1505_v27, %v1400_v26 }
 0xa2d   : > { %1402 = vst [vmem:[%s440_s24 + $0x4] sm:$0xf] %v1401_v28 }
 0xa2e PF: > { %s23_s25 = sadd.s32 1, %s1722_s25  }
 0xa2f   : > { %p20_p4 = scmp.ge.s32.totalorder %s23_s25, 4  }
 0xa31   :  { %22 = sbr.rel (!%p20_p4) target bundleno = 1 (0x1), region = 102 }

// kernel: model_forward.11
= control target key start
LH: loop header
LB: loop body
LE: loop exit
PB: predicated region body
PF: predicated region fallthrough
CT: control target
= control target key end

     0   :  { %s568_s12 = smov 0   ;;  %s598_s0 = inlined_call_operand.vmem [shape: bf16[2,7,2,32], index: 0, kind: input, shape index: {}]   ;;  %s599_s1 = inlined_call_operand.vmem [shape: bf16[32,128], index: 1, kind: input, shape index: {}]   ;;  %s600_s2 = inlined_call_operand.vmem [shape: f32[1,128], index: 2, kind: input, shape index: {}]   ;;  %s601_s3 = inlined_call_operand.vmem [shape: f32[2,7,128], index: 3, kind: output, shape index: {}]  }
   0x1 LB: > { %s489_s13 = sadd.s32 4294967295, %s543_s12   ;;  %p493_p0 = scmp.ge.s32.totalorder %s543_s12, 1  ;;  %s543_s12 = sphi %s568_s12, %s13_s12  }
   0x2   : > { %p136_p1 = scmp.lt.s32.totalorder %s543_s12, 3 }
   0x4   : > { %p137_p2 = pnand %p493_p0, %p136_p1 }
   0x5   : > { %v531_v0 = vld [vmem:[%s599_s1] sm:$0xff] (!%p137_p2)   ;;  %v545_v1 = vmov (!%p137_p2), 0.0   ;;  %v532_v2 = vld [vmem:[%s599_s1 + $0x8] sm:$0xff] (!%p137_p2)   ;;  %vm546_vm0 = vmmov (!%p137_p2), 0   ;;  %p158_p3 = scmp.lt.s32.totalorder (!%p137_p2), %s489_s13, 1  ;;  %v244_v3 = vlaneseq (!%p137_p2)  ;;  %vm347_vm1 = vcmask (!%p137_p2), 1041409  }
   0x6   : > { %140 = sbr.rel (%p137_p2) target bundleno = 572 (0x23c), region = 32  ;;  %511 = vmatprep.subr.bf16.mxu0 (!%p137_p2), %v545_v1  ;;  %515 = vmatprep.mubr.msk.bf16.mxu0 (!%p137_p2), %vm546_vm0, %v545_v1  ;;  %v547_v4 = vmov (!%p137_p2), 1966171168   ;;  %vm350_vm2 = vcmask (!%p137_p2), 1042434   ;;  %vm353_vm3 = vcmask (!%p137_p2), 1043459   ;;  %vm356_vm4 = vcmask (!%p137_p2), 1044484  }
   0x7   : > { %512 = vmatpush3.bf16.msra.mxu0 (!%p137_p2), %v531_v0  ;;  %v242_v5 = vunpack.c.l.s4 (!%p137_p2), %v547_v4  ;;  %v245_v7 = vshrl.u32 (!%p137_p2), %v244_v3, 7  ;;  %vm359_vm5 = vcmask (!%p137_p2), 1045509   ;;  %vm362_vm6 = vcmask (!%p137_p2), 1046534   ;;  %v502_v0 = vld [vmem:[%s600_s2] ss:$0 sm:$0xff] (!%p137_p2) }
   0x8   : > { %513 = vmatprep.subr.bf16.mxu0 (!%p137_p2), %v545_v1  ;;  %vm377_vm7 = vcmask (!%p137_p2), 261120   ;;  %vm421_vm8 = vcmask (!%p137_p2), 1046528  }
   0x9   : > { %v243_v6 = vunpack.c.0.s8 (!%p137_p2), %v242_v5 }
   0xb   : > { %514 = vmatpush3.bf16.msra.mxu0 (!%p137_p2), %v532_v2  ;;  %v246_v14 = vsub.s32 (!%p137_p2), %v243_v6, %v245_v7 }
   0xd   : > { %s603_s13 = smov (!%p158_p3, %s489_s13), 1 }
   0xe   : > { %s519_s18 = smul.u32 7, %s603_s13  ;;  %s494_s24 = sshll.u32 %s603_s13, 3 }
   0xf   : > { %s165_s27 = scalar_lea.vmem %s601_s3, %s494_s24 }
  0x10   : > { %s161_s21 = scalar_lea.vmem %s598_s0, %s519_s18 }
  0x11   : > { %v167_v8 = vld [vmem:[%s161_s21] sm:$0x1]  ;;  %v168_v9 = vld [vmem:[%s161_s21 + $0x1] sm:$0x1]  ;;  %v169_v10 = vld [vmem:[%s161_s21 + $0x2] sm:$0x1] }
  0x12   : > { %v170_v11 = vld [vmem:[%s161_s21 + $0x3] sm:$0x1]  ;;  %v171_v12 = vld [vmem:[%s161_s21 + $0x4] sm:$0x1]  ;;  %v172_v13 = vld [vmem:[%s161_s21 + $0x5] sm:$0x1] }
  0x13   : > { %v173_v15 = vld [vmem:[%s161_s21 + $0x6] sm:$0x1]  ;;  %v175_v16 = vshrl.u32 %v167_v8, 16  ;;  %v180_v17 = vshrl.u32 %v168_v9, 16  ;;  %v185_v18 = vshrl.u32 %v169_v10, 16  ;;  %v190_v19 = vshrl.u32 %v170_v11, 16 }
  0x14   : > { %v195_v20 = vshrl.u32 %v171_v12, 16  ;;  %v200_v21 = vshrl.u32 %v172_v13, 16  ;;  %v205_v22 = vshrl.u32 %v173_v15, 16 }
  0x15   : > { %v216_v23 = vmax.bf16 %v175_v16, %v167_v8  ;;  %v217_v24 = vmax.bf16 %v180_v17, %v168_v9  ;;  %v218_v25 = vmax.bf16 %v185_v18, %v169_v10  ;;  %v219_v26 = vmax.bf16 %v190_v19, %v170_v11 }
  0x16   : > { %v220_v27 = vmax.bf16 %v195_v20, %v171_v12  ;;  %v221_v28 = vmax.bf16 %v200_v21, %v172_v13  ;;  %v222_v29 = vmax.bf16 %v205_v22, %v173_v15 }
  0x17   : > { %v247_v30 = vrot.slane %v216_v23, %v246_v14  ;;  %v261_v31 = vrot.slane %v217_v24, %v246_v14  ;;  %v275_v32 = vrot.slane %v218_v25, %v246_v14  ;;  %v289_v33 = vrot.slane %v219_v26, %v246_v14 }
  0x18   : > { %v303_v34 = vrot.slane %v220_v27, %v246_v14  ;;  %v317_v35 = vrot.slane %v221_v28, %v246_v14  ;;  %v331_v36 = vrot.slane %v222_v29, %v246_v14 }
  0x19   : > { %v254_v37 = vrot.slane %v247_v30, %v246_v14  ;;  %v268_v38 = vrot.slane %v261_v31, %v246_v14  ;;  %v282_v39 = vrot.slane %v275_v32, %v246_v14  ;;  %v296_v40 = vrot.slane %v289_v33, %v246_v14 }
  0x1a   : > { %v310_v41 = vrot.slane %v303_v34, %v246_v14  ;;  %v324_v42 = vrot.slane %v317_v35, %v246_v14  ;;  %v338_v43 = vrot.slane %v331_v36, %v246_v14 }
  0x1b   : > { %v339_v44 = vunpack.c.l.b16 %v254_v37  ;;  %v340_v45 = vunpack.c.l.b16 %v268_v38  ;;  %v341_v46 = vunpack.c.l.b16 %v282_v39  ;;  %v342_v47 = vunpack.c.l.b16 %v296_v40 }
  0x1c   : > { %v343_v48 = vunpack.c.l.b16 %v310_v41  ;;  %v344_v49 = vunpack.c.l.b16 %v324_v42  ;;  %v345_v50 = vunpack.c.l.b16 %v338_v43 }
  0x1d   : > { %v346_v51 = vrot.slane %v340_v45, 7  ;;  %v349_v52 = vrot.slane %v341_v46, 6  ;;  %v352_v53 = vrot.slane %v342_v47, 5 }
  0x1e   : > { %v355_v54 = vrot.slane %v343_v48, 4  ;;  %v358_v56 = vrot.slane %v344_v49, 3  ;;  %v361_v58 = vrot.slane %v345_v50, 2 }
  0x1f   : > { %v348_v55 = vsel %vm347_vm1, %v346_v51, %v339_v44 }
  0x20   : > { %v351_v57 = vsel %vm350_vm2, %v349_v52, %v348_v55 }
  0x21   : > { %v354_v59 = vsel %vm353_vm3, %v352_v53, %v351_v57 }
  0x22   : > { %v357_v60 = vsel %vm356_vm4, %v355_v54, %v354_v59 }
  0x23   : > { %v360_v61 = vsel %vm359_vm5, %v358_v56, %v357_v60 }
  0x24   : > { %v363_v62 = vsel %vm362_vm6, %v361_v58, %v360_v61 }
  0x25   : > { %v364_v63 = vpack.c.b16 %v363_v62, %v363_v62 }
  0x27   : > { %516 = vmatmul.mubr.msk.bf16.vlgmr.msra.gmra.mrb[0].mxu0 %vm377_vm7, %v364_v63 }
  0xfa   : > { %v415_v1 = vpop.f32.mrb[0].mxu0 }
  0xfb   : > { %v416_v2 = vadd.f32 %v502_v0, %v415_v1  ;;  %v517_v3 = vpop.f32.mrb[1].mxu0 }
  0xfc   : > { %v418_v4 = vpop.f32.mrb[2].mxu0 }
  0xfd   : > { %v518_v5 = vpop.f32.mrb[3].mxu0  ;;  %v422_v6 = vsel %vm421_vm8, %v416_v2, -inf }
  0xfe   : > { %423 = vmax.xlane.f32.xlu0 %v422_v6 }
 0x18b   : > { %v424_v7 = vpop.xlane.xlu0 %423 }
 0x18c   : > { %v425_v8 = vsub.f32 %v416_v2, %v424_v7 }
 0x18e   : > { %v426_v9 = vmul.f32 1.442695, %v425_v8 }
 0x190   : > { %533 = vpow2.f32 %v426_v9 }
 0x19a   : > { %v534_v10 = vpop.eup %533 }
 0x19b   : > { %v428_v11 = vsel %vm421_vm8, %v534_v10, 0.0 }
 0x19c   : > { %429 = vadd.xlane.f32.xlu0 %v428_v11 }
 0x229   : > { %v430_v12 = vpop.xlane.xlu0 %429 }
 0x22a   : > { %535 = vlog2.f32 %v430_v12 }
 0x234   : > { %v536_v13 = vpop.eup %535 }
 0x235   : > { %v432_v14 = vmul.f32 0.6931472, %v536_v13 }
 0x237   : > { %v433_v15 = vadd.f32 %v432_v14, %v424_v7 }
 0x239   : > { %v434_v16 = vsub.f32 %v416_v2, %v433_v15 }
 0x23b   : > { %435 = vst [vmem:[%s165_s27] sm:$0x7f] %v434_v16 }
 0x23c PF: > { %s13_s12 = sadd.s32 1, %s543_s12  }
 0x23d   : > { %p10_p4 = scmp.ge.s32.totalorder %s13_s12, 4  }
 0x23f   :  { %12 = sbr.rel (!%p10_p4) target bundleno = 1 (0x1), region = 62 }

</bundles_post_ra>
